<compile_context>
chip_gen: v5e
topology: v5e:2x2
jax: 0.10.0
libtpu: 0.0.40
codegen_flags: <defaults>
</compile_context>

<pallas_src>
import math
import numpy as np
import jax
import jax.numpy as jnp
from jax.experimental import pallas as pl
from jax.experimental.pallas import tpu as pltpu

# ---- small synthetic FLAN-T5 encoder config (scaled down) ----
VOCAB = 128
B = 2          # batch
S = 8          # max_length (small)
D = 32         # d_model
H = 4          # num attention heads
DK = 8         # d_kv per head  (H * DK == inner attention dim)
DFF = 64       # d_ff
NLAYERS = 2
HB = H * B     # fused (head, batch) leading batch axis used inside the kernel
NUM_BUCKETS = 32
MAX_DISTANCE = 128
EPS = 1e-6     # T5 LayerNorm (RMSNorm) eps


# ---------------------------------------------------------------------------
# Fused encoder kernel: one grid step == one T5 encoder block (layer)
# ---------------------------------------------------------------------------
def t5_encoder_kernel(x_ref, bias_ref, fln_ref,
                      ln1_ref, wq_ref, wk_ref, wv_ref, wo_ref,
                      ln2_ref, wi0_ref, wi1_ref, wo2_ref,
                      out_ref, resid_ref):
    """Grid axis 0 = layer index ("arbitrary": residual stream carried in VMEM scratch).

    x_ref:    (B*S, D)        initial embeddings (read only at layer 0)
    bias_ref: (H*B, S, S)     relative position bias, pre-tiled over batch
    fln_ref:  (1, D)          final RMSNorm weight
    ln*_ref:  (1, 1, D)       per-layer RMSNorm weights
    wq/wk/wv: (1, H*B, D, DK) per-layer, per-(head,batch) projection weights
    wo_ref:   (1, H*B, DK, D) per-layer output projection, split per head
    wi0/wi1:  (1, D, DFF)     gated-GELU FFN
    wo2_ref:  (1, DFF, D)
    out_ref:  (B*S, D)        last_hidden_state (written on the last layer)
    resid_ref:(B*S, D)        VMEM scratch: residual stream, persists across layers
    """
    l = pl.program_id(0)

    @pl.when(l == 0)
    def _():
        resid_ref[...] = x_ref[...]

    x = resid_ref[...]                                          # (B*S, D) f32

    # ---- self-attention sub-layer (pre-RMSNorm) ----
    var = jnp.mean(x * x, axis=-1, keepdims=True)
    normed = x * jax.lax.rsqrt(var + EPS) * ln1_ref[0]          # (B*S, D)

    # Present a (H*B, S, D) batched view (leading-axis broadcast + safe reshapes only):
    # one batched einsum then covers all heads and batch elements at once.
    normed_hb = jnp.broadcast_to(
        normed.reshape(B, S, D)[None], (H, B, S, D)).reshape(HB, S, D)

    q = jnp.einsum('nsd,ndk->nsk', normed_hb, wq_ref[0],
                   preferred_element_type=jnp.float32)          # (HB, S, DK)
    k = jnp.einsum('nsd,ndk->nsk', normed_hb, wk_ref[0],
                   preferred_element_type=jnp.float32)
    v = jnp.einsum('nsd,ndk->nsk', normed_hb, wv_ref[0],
                   preferred_element_type=jnp.float32)

    # T5 does NOT scale scores by 1/sqrt(dk); adds relative position bias.
    scores = jnp.einsum('nsd,ntd->nst', q, k,
                        preferred_element_type=jnp.float32) + bias_ref[...]
    scores = scores - jnp.max(scores, axis=-1, keepdims=True)
    p = jnp.exp(scores)
    p = p * pl.reciprocal(jnp.sum(p, axis=-1, keepdims=True), approx=True)

    ctx = jnp.einsum('nst,ntd->nsd', p, v,
                     preferred_element_type=jnp.float32)        # (HB, S, DK)
    proj = jnp.einsum('nsd,nde->nse', ctx, wo_ref[0],
                      preferred_element_type=jnp.float32)       # (HB, S, D)
    attn = jnp.sum(proj.reshape(H, B, S, D), axis=0).reshape(B * S, D)

    x = x + attn                                                # residual

    # ---- gated-GELU FFN sub-layer (pre-RMSNorm) ----
    var2 = jnp.mean(x * x, axis=-1, keepdims=True)
    normed2 = x * jax.lax.rsqrt(var2 + EPS) * ln2_ref[0]

    hg = jnp.dot(normed2, wi0_ref[0], preferred_element_type=jnp.float32)
    hl = jnp.dot(normed2, wi1_ref[0], preferred_element_type=jnp.float32)
    c = math.sqrt(2.0 / math.pi)                                # gelu_new (tanh approx)
    hg = 0.5 * hg * (1.0 + jnp.tanh(c * (hg + 0.044715 * hg * hg * hg)))
    ffn = jnp.dot(hg * hl, wo2_ref[0], preferred_element_type=jnp.float32)

    x = x + ffn                                                 # residual
    resid_ref[...] = x                                          # carry to next layer

    @pl.when(l == NLAYERS - 1)
    def _():
        # final RMSNorm fused into the last grid step
        varf = jnp.mean(x * x, axis=-1, keepdims=True)
        out_ref[...] = x * jax.lax.rsqrt(varf + EPS) * fln_ref[...]


# ---------------------------------------------------------------------------
# BlockSpec helpers
# ---------------------------------------------------------------------------
def _layer_spec(*tail):
    # stacked-per-layer parameter: block (1, *tail), indexed by the layer grid axis
    return pl.BlockSpec((1,) + tail, lambda l: (l,) + (0,) * len(tail))


def _const_spec(shape):
    # resident for the whole grid (block index never changes -> DMA'd once)
    return pl.BlockSpec(shape, lambda l: (0,) * len(shape))


# ---------------------------------------------------------------------------
# Glue (plain JAX): embedding lookup, position bias, weight re-layout (one-time)
# ---------------------------------------------------------------------------
def relative_position_bucket(rel_pos, num_buckets=NUM_BUCKETS, max_distance=MAX_DISTANCE):
    # bidirectional (encoder)
    num_buckets = num_buckets // 2
    ret = (rel_pos > 0).astype(jnp.int32) * num_buckets
    n = jnp.abs(rel_pos)
    max_exact = num_buckets // 2
    is_small = n < max_exact
    n_safe = jnp.maximum(n, 1).astype(jnp.float32)
    val_if_large = max_exact + (
        jnp.log(n_safe / max_exact)
        / np.log(max_distance / max_exact)
        * (num_buckets - max_exact)
    ).astype(jnp.int32)
    val_if_large = jnp.minimum(val_if_large, num_buckets - 1)
    return ret + jnp.where(is_small, n, val_if_large)


def compute_position_bias(rel_bias_table):
    ctx_pos = jnp.arange(S)[:, None]
    mem_pos = jnp.arange(S)[None, :]
    rel_pos = mem_pos - ctx_pos                                # (S, S)
    buckets = relative_position_bucket(rel_pos)                # (S, S)
    bias = rel_bias_table[buckets]                             # (S, S, H)
    return jnp.transpose(bias, (2, 0, 1)).astype(jnp.float32)  # (H, S, S)


def _prep_layer_weights(p):
    """Re-layout one layer's weights so heads live on a leading batch axis (h-major,
    b-minor, matching the kernel's HB ordering). Pure wrapper-side layout plumbing."""
    wq = jnp.repeat(p["wq"].reshape(D, H, DK).transpose(1, 0, 2), B, axis=0)   # (HB, D, DK)
    wk = jnp.repeat(p["wk"].reshape(D, H, DK).transpose(1, 0, 2), B, axis=0)
    wv = jnp.repeat(p["wv"].reshape(D, H, DK).transpose(1, 0, 2), B, axis=0)
    wo = jnp.repeat(p["wo"].reshape(H, DK, D), B, axis=0)                      # (HB, DK, D)
    return wq, wk, wv, wo


@jax.jit
def flan_t5_encode(tokens, emb_table, rel_bias_table, layers, final_ln):
    """Equivalent of FrozenFLANEmbedder.forward after tokenization:
    returns last_hidden_state of shape (B, S, D)."""
    x = emb_table[tokens].astype(jnp.float32).reshape(B * S, D)   # (B*S, D)

    bias = compute_position_bias(rel_bias_table)                  # (H, S, S), shared
    bias_hb = jnp.repeat(bias, B, axis=0)                          # (H*B, S, S)

    prepped = [_prep_layer_weights(p) for p in layers]
    wq_all = jnp.stack([w[0] for w in prepped])                    # (L, HB, D, DK)
    wk_all = jnp.stack([w[1] for w in prepped])
    wv_all = jnp.stack([w[2] for w in prepped])
    wo_all = jnp.stack([w[3] for w in prepped])                    # (L, HB, DK, D)
    ln1_all = jnp.stack([p["ln1"] for p in layers])                # (L, 1, D)
    ln2_all = jnp.stack([p["ln2"] for p in layers])                # (L, 1, D)
    wi0_all = jnp.stack([p["wi0"] for p in layers])                # (L, D, DFF)
    wi1_all = jnp.stack([p["wi1"] for p in layers])                # (L, D, DFF)
    wo2_all = jnp.stack([p["wo2"] for p in layers])                # (L, DFF, D)

    out = pl.pallas_call(
        t5_encoder_kernel,
        out_shape=jax.ShapeDtypeStruct((B * S, D), jnp.float32),
        grid=(NLAYERS,),
        in_specs=[
            _const_spec((B * S, D)),          # x (embeddings)
            _const_spec((HB, S, S)),          # position bias (resident, DMA'd once)
            _const_spec((1, D)),              # final RMSNorm weight
            _layer_spec(1, D),                # ln1
            _layer_spec(HB, D, DK),           # wq
            _layer_spec(HB, D, DK),           # wk
            _layer_spec(HB, D, DK),           # wv
            _layer_spec(HB, DK, D),           # wo
            _layer_spec(1, D),                # ln2
            _layer_spec(D, DFF),              # wi0
            _layer_spec(D, DFF),              # wi1
            _layer_spec(DFF, D),              # wo2
        ],
        out_specs=_const_spec((B * S, D)),
        scratch_shapes=[pltpu.VMEM((B * S, D), jnp.float32)],      # residual stream
        compiler_params=pltpu.CompilerParams(
            dimension_semantics=("arbitrary",)),                   # layers are sequential
    )(x, bias_hb, final_ln, ln1_all, wq_all, wk_all, wv_all, wo_all,
      ln2_all, wi0_all, wi1_all, wo2_all)

    return out.reshape(B, S, D)


# ---------------------------------------------------------------------------
# Pure-JAX reference (same math, HF-style per-head attention) for verification
# ---------------------------------------------------------------------------
def _reference_encode(tokens, emb_table, rel_bias_table, layers, final_ln):
    x = emb_table[tokens].astype(jnp.float32)                     # (B, S, D)
    bias = compute_position_bias(rel_bias_table)                  # (H, S, S)

    def rms(v, w):
        return v * jax.lax.rsqrt(jnp.mean(v * v, -1, keepdims=True) + EPS) * w

    c = math.sqrt(2.0 / math.pi)
    for p in layers:
        n1 = rms(x, p["ln1"][0])
        q = n1 @ p["wq"]; k = n1 @ p["wk"]; v = n1 @ p["wv"]
        qh = q.reshape(B, S, H, DK).transpose(0, 2, 1, 3)
        kh = k.reshape(B, S, H, DK).transpose(0, 2, 1, 3)
        vh = v.reshape(B, S, H, DK).transpose(0, 2, 1, 3)
        s = jnp.einsum('bhqd,bhkd->bhqk', qh, kh) + bias[None]
        pr = jax.nn.softmax(s, axis=-1)
        ctx = jnp.einsum('bhqk,bhkd->bhqd', pr, vh)
        ctx = ctx.transpose(0, 2, 1, 3).reshape(B, S, H * DK)
        x = x + ctx @ p["wo"]
        n2 = rms(x, p["ln2"][0])
        hg = n2 @ p["wi0"]; hl = n2 @ p["wi1"]
        hg = 0.5 * hg * (1.0 + jnp.tanh(c * (hg + 0.044715 * hg * hg * hg)))
        x = x + (hg * hl) @ p["wo2"]
    return rms(x, final_ln[0])


# ---------------------------------------------------------------------------
# Deterministic parameter / input construction + run
# ---------------------------------------------------------------------------
if __name__ == "__main__":
    key = jax.random.PRNGKey(0)
    keys = jax.random.split(key, 3 + NLAYERS)

    # "tokenizer output": synthetic deterministic token ids (padding='max_length')
    tokens = jax.random.randint(keys[0], (B, S), 0, VOCAB, dtype=jnp.int32)

    emb_table = 0.02 * jax.random.normal(keys[1], (VOCAB, D), jnp.float32)
    rel_bias_table = 0.02 * jax.random.normal(keys[2], (NUM_BUCKETS, H), jnp.float32)

    layers = []
    for l in range(NLAYERS):
        lk = jax.random.split(keys[3 + l], 7)
        layers.append(dict(
            ln1=jnp.ones((1, D), jnp.float32),
            wq=0.05 * jax.random.normal(lk[0], (D, H * DK), jnp.float32),
            wk=0.05 * jax.random.normal(lk[1], (D, H * DK), jnp.float32),
            wv=0.05 * jax.random.normal(lk[2], (D, H * DK), jnp.float32),
            wo=0.05 * jax.random.normal(lk[3], (H * DK, D), jnp.float32),
            ln2=jnp.ones((1, D), jnp.float32),
            wi0=0.05 * jax.random.normal(lk[4], (D, DFF), jnp.float32),
            wi1=0.05 * jax.random.normal(lk[5], (D, DFF), jnp.float32),
            wo2=0.05 * jax.random.normal(lk[6], (DFF, D), jnp.float32),
        ))
    final_ln = jnp.ones((1, D), jnp.float32)

    z = flan_t5_encode(tokens, emb_table, rel_bias_table, layers, final_ln)
    jax.block_until_ready(z)
    assert z.shape == (B, S, D) and z.dtype == jnp.float32

    z_ref = _reference_encode(tokens, emb_table, rel_bias_table, layers, final_ln)
    np.testing.assert_allclose(np.asarray(z), np.asarray(z_ref), rtol=1e-2, atol=1e-2)

    print("KERNEL_OK")
</pallas_src>

<mosaic_0001>
module attributes {stable_mosaic.version = 11 : i64} {
  func.func @t5_encoder_kernel(%arg0: i32, %arg1: memref<16x32xf32, #tpu.memory_space<vmem>>, %arg2: memref<8x8x8xf32, #tpu.memory_space<vmem>>, %arg3: memref<1x32xf32, #tpu.memory_space<vmem>>, %arg4: memref<1x1x32xf32, #tpu.memory_space<vmem>>, %arg5: memref<1x8x32x8xf32, #tpu.memory_space<vmem>>, %arg6: memref<1x8x32x8xf32, #tpu.memory_space<vmem>>, %arg7: memref<1x8x32x8xf32, #tpu.memory_space<vmem>>, %arg8: memref<1x8x8x32xf32, #tpu.memory_space<vmem>>, %arg9: memref<1x1x32xf32, #tpu.memory_space<vmem>>, %arg10: memref<1x32x64xf32, #tpu.memory_space<vmem>>, %arg11: memref<1x32x64xf32, #tpu.memory_space<vmem>>, %arg12: memref<1x64x32xf32, #tpu.memory_space<vmem>>, %arg13: memref<16x32xf32, #tpu.memory_space<vmem>>, %arg14: memref<16x32xf32, #tpu.memory_space<vmem>>) attributes {dimension_semantics = [#tpu.dimension_semantics<arbitrary>], iteration_bounds = array<i64: 2>, scalar_prefetch = 0 : i64, scratch_operands = 1 : i64, tpu.core_type = #tpu.core_type<tc>, window_params = [{pipeline_mode = #tpu.pipeline_mode<synchronous>, transform_indices = @transform_0, window_bounds = array<i64: 16, 32>}, {pipeline_mode = #tpu.pipeline_mode<synchronous>, transform_indices = @transform_1, window_bounds = array<i64: 8, 8, 8>}, {pipeline_mode = #tpu.pipeline_mode<synchronous>, transform_indices = @transform_2, window_bounds = array<i64: 1, 32>}, {transform_indices = @transform_3, window_bounds = array<i64: 1, 1, 32>}, {transform_indices = @transform_4, window_bounds = array<i64: 1, 8, 32, 8>}, {transform_indices = @transform_5, window_bounds = array<i64: 1, 8, 32, 8>}, {transform_indices = @transform_6, window_bounds = array<i64: 1, 8, 32, 8>}, {transform_indices = @transform_7, window_bounds = array<i64: 1, 8, 8, 32>}, {transform_indices = @transform_8, window_bounds = array<i64: 1, 1, 32>}, {transform_indices = @transform_9, window_bounds = array<i64: 1, 32, 64>}, {transform_indices = @transform_10, window_bounds = array<i64: 1, 32, 64>}, {transform_indices = @transform_11, window_bounds = array<i64: 1, 64, 32>}, {pipeline_mode = #tpu.pipeline_mode<synchronous>, transform_indices = @transform_12, window_bounds = array<i64: 16, 32>}]} {
    %c0_i32 = arith.constant 0 : i32
    %0 = arith.cmpi eq, %arg0, %c0_i32 : i32
    %1 = arith.extui %0 : i1 to i32
    %c0_i32_0 = arith.constant 0 : i32
    %2 = arith.cmpi ne, %1, %c0_i32_0 : i32
    scf.if %2 {
      %c0_60 = arith.constant 0 : index
      %c0_61 = arith.constant 0 : index
      %95 = vector.load %arg1[%c0_60, %c0_61] : memref<16x32xf32, #tpu.memory_space<vmem>>, vector<16x32xf32>
      %c0_62 = arith.constant 0 : index
      %c0_63 = arith.constant 0 : index
      %96 = vector.load %arg14[%c0_62, %c0_63] : memref<16x32xf32, #tpu.memory_space<vmem>>, vector<16x32xf32>
      tpu.vector_store %arg14[%c0_62, %c0_63], %95 {strides = array<i32>} : memref<16x32xf32, #tpu.memory_space<vmem>>, vector<16x32xf32>,
    } else {
    }
    %c0 = arith.constant 0 : index
    %c0_1 = arith.constant 0 : index
    %3 = vector.load %arg14[%c0, %c0_1] : memref<16x32xf32, #tpu.memory_space<vmem>>, vector<16x32xf32>
    %4 = arith.mulf %3, %3 : vector<16x32xf32>
    %cst = arith.constant dense<0.000000e+00> : vector<16xf32>
    %5 = vector.multi_reduction <add>, %4, %cst [1] : vector<16x32xf32> to vector<16xf32>
    %6 = vector.shape_cast %5 : vector<16xf32> to vector<16x1xf32>
    %cst_2 = arith.constant 3.200000e+01 : f32
    %7 = vector.broadcast %cst_2 : f32 to vector<16x1xf32>
    %8 = arith.divf %6, %7 : vector<16x1xf32>
    %cst_3 = arith.constant 9.99999997E-7 : f32
    %9 = vector.broadcast %cst_3 : f32 to vector<16x1xf32>
    %10 = arith.addf %8, %9 : vector<16x1xf32>
    %11 = math.rsqrt %10 : vector<16x1xf32>
    %12 = vector.broadcast %11 : vector<16x1xf32> to vector<16x32xf32>
    %13 = arith.mulf %3, %12 : vector<16x32xf32>
    %c0_4 = arith.constant 0 : index
    %c0_5 = arith.constant 0 : index
    %c0_6 = arith.constant 0 : index
    %14 = vector.load %arg4[%c0_4, %c0_5, %c0_6] : memref<1x1x32xf32, #tpu.memory_space<vmem>>, vector<1x1x32xf32>
    %15 = vector.shape_cast %14 : vector<1x1x32xf32> to vector<1x32xf32>
    %16 = vector.broadcast %15 : vector<1x32xf32> to vector<16x32xf32>
    %17 = arith.mulf %13, %16 : vector<16x32xf32>
    %18 = vector.shape_cast %17 : vector<16x32xf32> to vector<2x8x32xf32>
    %19 = vector.shape_cast %18 : vector<2x8x32xf32> to vector<1x2x8x32xf32>
    %20 = vector.shape_cast %19 : vector<1x2x8x32xf32> to vector<1x2x8x32xf32>
    %21 = vector.broadcast %20 : vector<1x2x8x32xf32> to vector<4x2x8x32xf32>
    %22 = vector.shape_cast %21 : vector<4x2x8x32xf32> to vector<8x8x32xf32>
    %c0_7 = arith.constant 0 : index
    %c0_8 = arith.constant 0 : index
    %c0_9 = arith.constant 0 : index
    %c0_10 = arith.constant 0 : index
    %23 = vector.load %arg5[%c0_7, %c0_8, %c0_9, %c0_10] : memref<1x8x32x8xf32, #tpu.memory_space<vmem>>, vector<1x8x32x8xf32>
    %24 = vector.shape_cast %23 : vector<1x8x32x8xf32> to vector<8x32x8xf32>
    "tpu.trace_start"() <{level = 10 : i32, message = "nsd,ndk->nsk"}> : () -> ()
    %cst_11 = arith.constant dense<0.000000e+00> : vector<8x8x8xf32>
    %25 = tpu.matmul %22, %24, %cst_11 {dimension_numbers = #tpu.dot_dimension_numbers<[2], [1], [1], [2], [0, 0, 0, 1, 1, 2], [0], [0]>} : vector<8x8x32xf32>, vector<8x32x8xf32>, vector<8x8x8xf32> -> vector<8x8x8xf32>
    "tpu.trace_stop"() : () -> ()
    %c0_12 = arith.constant 0 : index
    %c0_13 = arith.constant 0 : index
    %c0_14 = arith.constant 0 : index
    %c0_15 = arith.constant 0 : index
    %26 = vector.load %arg6[%c0_12, %c0_13, %c0_14, %c0_15] : memref<1x8x32x8xf32, #tpu.memory_space<vmem>>, vector<1x8x32x8xf32>
    %27 = vector.shape_cast %26 : vector<1x8x32x8xf32> to vector<8x32x8xf32>
    "tpu.trace_start"() <{level = 10 : i32, message = "nsd,ndk->nsk"}> : () -> ()
    %cst_16 = arith.constant dense<0.000000e+00> : vector<8x8x8xf32>
    %28 = tpu.matmul %22, %27, %cst_16 {dimension_numbers = #tpu.dot_dimension_numbers<[2], [1], [1], [2], [0, 0, 0, 1, 1, 2], [0], [0]>} : vector<8x8x32xf32>, vector<8x32x8xf32>, vector<8x8x8xf32> -> vector<8x8x8xf32>
    "tpu.trace_stop"() : () -> ()
    %c0_17 = arith.constant 0 : index
    %c0_18 = arith.constant 0 : index
    %c0_19 = arith.constant 0 : index
    %c0_20 = arith.constant 0 : index
    %29 = vector.load %arg7[%c0_17, %c0_18, %c0_19, %c0_20] : memref<1x8x32x8xf32, #tpu.memory_space<vmem>>, vector<1x8x32x8xf32>
    %30 = vector.shape_cast %29 : vector<1x8x32x8xf32> to vector<8x32x8xf32>
    "tpu.trace_start"() <{level = 10 : i32, message = "nsd,ndk->nsk"}> : () -> ()
    %cst_21 = arith.constant dense<0.000000e+00> : vector<8x8x8xf32>
    %31 = tpu.matmul %22, %30, %cst_21 {dimension_numbers = #tpu.dot_dimension_numbers<[2], [1], [1], [2], [0, 0, 0, 1, 1, 2], [0], [0]>} : vector<8x8x32xf32>, vector<8x32x8xf32>, vector<8x8x8xf32> -> vector<8x8x8xf32>
    "tpu.trace_stop"() : () -> ()
    "tpu.trace_start"() <{level = 10 : i32, message = "nsd,ntd->nst"}> : () -> ()
    %cst_22 = arith.constant dense<0.000000e+00> : vector<8x8x8xf32>
    %32 = tpu.matmul %25, %28, %cst_22 {dimension_numbers = #tpu.dot_dimension_numbers<[2], [2], [1], [1], [0, 0, 0, 1, 1, 1], [0], [0]>} : vector<8x8x8xf32>, vector<8x8x8xf32>, vector<8x8x8xf32> -> vector<8x8x8xf32>
    "tpu.trace_stop"() : () -> ()
    %c0_23 = arith.constant 0 : index
    %c0_24 = arith.constant 0 : index
    %c0_25 = arith.constant 0 : index
    %33 = vector.load %arg2[%c0_23, %c0_24, %c0_25] : memref<8x8x8xf32, #tpu.memory_space<vmem>>, vector<8x8x8xf32>
    %34 = arith.addf %32, %33 : vector<8x8x8xf32>
    %cst_26 = arith.constant dense<0xFF800000> : vector<8x8xf32>
    %35 = vector.multi_reduction <maximumf>, %34, %cst_26 [2] : vector<8x8x8xf32> to vector<8x8xf32>
    %36 = vector.shape_cast %35 : vector<8x8xf32> to vector<8x8x1xf32>
    %37 = vector.broadcast %36 : vector<8x8x1xf32> to vector<8x8x8xf32>
    %38 = arith.subf %34, %37 : vector<8x8x8xf32>
    %39 = math.exp %38 : vector<8x8x8xf32>
    %cst_27 = arith.constant dense<0.000000e+00> : vector<8x8xf32>
    %40 = vector.multi_reduction <add>, %39, %cst_27 [2] : vector<8x8x8xf32> to vector<8x8xf32>
    %41 = vector.shape_cast %40 : vector<8x8xf32> to vector<8x8x1xf32>
    %42 = tpu.reciprocal %41 {approx = true} : vector<8x8x1xf32> -> vector<8x8x1xf32>
    %43 = vector.broadcast %42 : vector<8x8x1xf32> to vector<8x8x8xf32>
    %44 = arith.mulf %39, %43 : vector<8x8x8xf32>
    "tpu.trace_start"() <{level = 10 : i32, message = "nst,ntd->nsd"}> : () -> ()
    %cst_28 = arith.constant dense<0.000000e+00> : vector<8x8x8xf32>
    %45 = tpu.matmul %44, %31, %cst_28 {dimension_numbers = #tpu.dot_dimension_numbers<[2], [1], [1], [2], [0, 0, 0, 1, 1, 2], [0], [0]>} : vector<8x8x8xf32>, vector<8x8x8xf32>, vector<8x8x8xf32> -> vector<8x8x8xf32>
    "tpu.trace_stop"() : () -> ()
    %c0_29 = arith.constant 0 : index
    %c0_30 = arith.constant 0 : index
    %c0_31 = arith.constant 0 : index
    %c0_32 = arith.constant 0 : index
    %46 = vector.load %arg8[%c0_29, %c0_30, %c0_31, %c0_32] : memref<1x8x8x32xf32, #tpu.memory_space<vmem>>, vector<1x8x8x32xf32>
    %47 = vector.shape_cast %46 : vector<1x8x8x32xf32> to vector<8x8x32xf32>
    "tpu.trace_start"() <{level = 10 : i32, message = "nsd,nde->nse"}> : () -> ()
    %cst_33 = arith.constant dense<0.000000e+00> : vector<8x8x32xf32>
    %48 = tpu.matmul %45, %47, %cst_33 {dimension_numbers = #tpu.dot_dimension_numbers<[2], [1], [1], [2], [0, 0, 0, 1, 1, 2], [0], [0]>} : vector<8x8x8xf32>, vector<8x8x32xf32>, vector<8x8x32xf32> -> vector<8x8x32xf32>
    "tpu.trace_stop"() : () -> ()
    %49 = vector.shape_cast %48 : vector<8x8x32xf32> to vector<4x2x8x32xf32>
    %cst_34 = arith.constant dense<0.000000e+00> : vector<2x8x32xf32>
    %50 = vector.multi_reduction <add>, %49, %cst_34 [0] : vector<4x2x8x32xf32> to vector<2x8x32xf32>
    %51 = vector.shape_cast %50 : vector<2x8x32xf32> to vector<16x32xf32>
    %52 = arith.addf %3, %51 : vector<16x32xf32>
    %53 = arith.mulf %52, %52 : vector<16x32xf32>
    %cst_35 = arith.constant dense<0.000000e+00> : vector<16xf32>
    %54 = vector.multi_reduction <add>, %53, %cst_35 [1] : vector<16x32xf32> to vector<16xf32>
    %55 = vector.shape_cast %54 : vector<16xf32> to vector<16x1xf32>
    %cst_36 = arith.constant 3.200000e+01 : f32
    %56 = vector.broadcast %cst_36 : f32 to vector<16x1xf32>
    %57 = arith.divf %55, %56 : vector<16x1xf32>
    %cst_37 = arith.constant 9.99999997E-7 : f32
    %58 = vector.broadcast %cst_37 : f32 to vector<16x1xf32>
    %59 = arith.addf %57, %58 : vector<16x1xf32>
    %60 = math.rsqrt %59 : vector<16x1xf32>
    %61 = vector.broadcast %60 : vector<16x1xf32> to vector<16x32xf32>
    %62 = arith.mulf %52, %61 : vector<16x32xf32>
    %c0_38 = arith.constant 0 : index
    %c0_39 = arith.constant 0 : index
    %c0_40 = arith.constant 0 : index
    %63 = vector.load %arg9[%c0_38, %c0_39, %c0_40] : memref<1x1x32xf32, #tpu.memory_space<vmem>>, vector<1x1x32xf32>
    %64 = vector.shape_cast %63 : vector<1x1x32xf32> to vector<1x32xf32>
    %65 = vector.broadcast %64 : vector<1x32xf32> to vector<16x32xf32>
    %66 = arith.mulf %62, %65 : vector<16x32xf32>
    %c0_41 = arith.constant 0 : index
    %c0_42 = arith.constant 0 : index
    %c0_43 = arith.constant 0 : index
    %67 = vector.load %arg10[%c0_41, %c0_42, %c0_43] : memref<1x32x64xf32, #tpu.memory_space<vmem>>, vector<1x32x64xf32>
    %68 = vector.shape_cast %67 : vector<1x32x64xf32> to vector<32x64xf32>
    %cst_44 = arith.constant dense<0.000000e+00> : vector<16x64xf32>
    %69 = tpu.matmul %66, %68, %cst_44 {dimension_numbers = #tpu.dot_dimension_numbers<[1], [0], [0], [1], [0, 0, 1, 1], [], []>} : vector<16x32xf32>, vector<32x64xf32>, vector<16x64xf32> -> vector<16x64xf32>
    %c0_45 = arith.constant 0 : index
    %c0_46 = arith.constant 0 : index
    %c0_47 = arith.constant 0 : index
    %70 = vector.load %arg11[%c0_45, %c0_46, %c0_47] : memref<1x32x64xf32, #tpu.memory_space<vmem>>, vector<1x32x64xf32>
    %71 = vector.shape_cast %70 : vector<1x32x64xf32> to vector<32x64xf32>
    %cst_48 = arith.constant dense<0.000000e+00> : vector<16x64xf32>
    %72 = tpu.matmul %66, %71, %cst_48 {dimension_numbers = #tpu.dot_dimension_numbers<[1], [0], [0], [1], [0, 0, 1, 1], [], []>} : vector<16x32xf32>, vector<32x64xf32>, vector<16x64xf32> -> vector<16x64xf32>
    %cst_49 = arith.constant 5.000000e-01 : f32
    %73 = vector.broadcast %cst_49 : f32 to vector<16x64xf32>
    %74 = arith.mulf %73, %69 : vector<16x64xf32>
    %cst_50 = arith.constant 4.471500e-02 : f32
    %75 = vector.broadcast %cst_50 : f32 to vector<16x64xf32>
    %76 = arith.mulf %75, %69 : vector<16x64xf32>
    %77 = arith.mulf %76, %69 : vector<16x64xf32>
    %78 = arith.mulf %77, %69 : vector<16x64xf32>
    %79 = arith.addf %69, %78 : vector<16x64xf32>
    %cst_51 = arith.constant 0.797884583 : f32
    %80 = vector.broadcast %cst_51 : f32 to vector<16x64xf32>
    %81 = arith.mulf %80, %79 : vector<16x64xf32>
    %82 = math.tanh %81 : vector<16x64xf32>
    %cst_52 = arith.constant 1.000000e+00 : f32
    %83 = vector.broadcast %cst_52 : f32 to vector<16x64xf32>
    %84 = arith.addf %83, %82 : vector<16x64xf32>
    %85 = arith.mulf %74, %84 : vector<16x64xf32>
    %86 = arith.mulf %85, %72 : vector<16x64xf32>
    %c0_53 = arith.constant 0 : index
    %c0_54 = arith.constant 0 : index
    %c0_55 = arith.constant 0 : index
    %87 = vector.load %arg12[%c0_53, %c0_54, %c0_55] : memref<1x64x32xf32, #tpu.memory_space<vmem>>, vector<1x64x32xf32>
    %88 = vector.shape_cast %87 : vector<1x64x32xf32> to vector<64x32xf32>
    %cst_56 = arith.constant dense<0.000000e+00> : vector<16x32xf32>
    %89 = tpu.matmul %86, %88, %cst_56 {dimension_numbers = #tpu.dot_dimension_numbers<[1], [0], [0], [1], [0, 0, 1, 1], [], []>} : vector<16x64xf32>, vector<64x32xf32>, vector<16x32xf32> -> vector<16x32xf32>
    %90 = arith.addf %52, %89 : vector<16x32xf32>
    %c0_57 = arith.constant 0 : index
    %c0_58 = arith.constant 0 : index
    %91 = vector.load %arg14[%c0_57, %c0_58] : memref<16x32xf32, #tpu.memory_space<vmem>>, vector<16x32xf32>
    tpu.vector_store %arg14[%c0_57, %c0_58], %90 {strides = array<i32>} : memref<16x32xf32, #tpu.memory_space<vmem>>, vector<16x32xf32>,
    %c1_i32 = arith.constant 1 : i32
    %92 = arith.cmpi eq, %arg0, %c1_i32 : i32
    %93 = arith.extui %92 : i1 to i32
    %c0_i32_59 = arith.constant 0 : i32
    %94 = arith.cmpi ne, %93, %c0_i32_59 : i32
    scf.if %94 {
      %95 = arith.mulf %90, %90 : vector<16x32xf32>
      %cst_60 = arith.constant dense<0.000000e+00> : vector<16xf32>
      %96 = vector.multi_reduction <add>, %95, %cst_60 [1] : vector<16x32xf32> to vector<16xf32>
      %97 = vector.shape_cast %96 : vector<16xf32> to vector<16x1xf32>
      %cst_61 = arith.constant 3.200000e+01 : f32
      %98 = vector.broadcast %cst_61 : f32 to vector<16x1xf32>
      %99 = arith.divf %97, %98 : vector<16x1xf32>
      %cst_62 = arith.constant 9.99999997E-7 : f32
      %100 = vector.broadcast %cst_62 : f32 to vector<16x1xf32>
      %101 = arith.addf %99, %100 : vector<16x1xf32>
      %102 = math.rsqrt %101 : vector<16x1xf32>
      %103 = vector.broadcast %102 : vector<16x1xf32> to vector<16x32xf32>
      %104 = arith.mulf %90, %103 : vector<16x32xf32>
      %c0_63 = arith.constant 0 : index
      %c0_64 = arith.constant 0 : index
      %105 = vector.load %arg3[%c0_63, %c0_64] : memref<1x32xf32, #tpu.memory_space<vmem>>, vector<1x32xf32>
      %106 = vector.broadcast %105 : vector<1x32xf32> to vector<16x32xf32>
      %107 = arith.mulf %104, %106 : vector<16x32xf32>
      %c0_65 = arith.constant 0 : index
      %c0_66 = arith.constant 0 : index
      %108 = vector.load %arg13[%c0_65, %c0_66] : memref<16x32xf32, #tpu.memory_space<vmem>>, vector<16x32xf32>
      tpu.vector_store %arg13[%c0_65, %c0_66], %107 {strides = array<i32>} : memref<16x32xf32, #tpu.memory_space<vmem>>, vector<16x32xf32>,
    } else {
    }
    return
  }
  func.func @transform_0(%arg0: i32) -> (i32, i32) {
    %c0_i32 = arith.constant 0 : i32
    %c0_i32_0 = arith.constant 0 : i32
    %c0_i32_1 = arith.constant 0 : i32
    return %c0_i32, %c0_i32_0 : i32, i32
  }
  func.func @transform_1(%arg0: i32) -> (i32, i32, i32) {
    %c0_i32 = arith.constant 0 : i32
    %c0_i32_0 = arith.constant 0 : i32
    %c0_i32_1 = arith.constant 0 : i32
    %c0_i32_2 = arith.constant 0 : i32
    return %c0_i32, %c0_i32_0, %c0_i32_1 : i32, i32, i32
  }
  func.func @transform_2(%arg0: i32) -> (i32, i32) {
    %c0_i32 = arith.constant 0 : i32
    %c0_i32_0 = arith.constant 0 : i32
    %c0_i32_1 = arith.constant 0 : i32
    return %c0_i32, %c0_i32_0 : i32, i32
  }
  func.func @transform_3(%arg0: i32) -> (i32, i32, i32) {
    %c0_i32 = arith.constant 0 : i32
    %c0_i32_0 = arith.constant 0 : i32
    %c0_i32_1 = arith.constant 0 : i32
    return %arg0, %c0_i32, %c0_i32_0 : i32, i32, i32
  }
  func.func @transform_4(%arg0: i32) -> (i32, i32, i32, i32) {
    %c0_i32 = arith.constant 0 : i32
    %c0_i32_0 = arith.constant 0 : i32
    %c0_i32_1 = arith.constant 0 : i32
    %c0_i32_2 = arith.constant 0 : i32
    return %arg0, %c0_i32, %c0_i32_0, %c0_i32_1 : i32, i32, i32, i32
  }
  func.func @transform_5(%arg0: i32) -> (i32, i32, i32, i32) {
    %c0_i32 = arith.constant 0 : i32
    %c0_i32_0 = arith.constant 0 : i32
    %c0_i32_1 = arith.constant 0 : i32
    %c0_i32_2 = arith.constant 0 : i32
    return %arg0, %c0_i32, %c0_i32_0, %c0_i32_1 : i32, i32, i32, i32
  }
  func.func @transform_6(%arg0: i32) -> (i32, i32, i32, i32) {
    %c0_i32 = arith.constant 0 : i32
    %c0_i32_0 = arith.constant 0 : i32
    %c0_i32_1 = arith.constant 0 : i32
    %c0_i32_2 = arith.constant 0 : i32
    return %arg0, %c0_i32, %c0_i32_0, %c0_i32_1 : i32, i32, i32, i32
  }
  func.func @transform_7(%arg0: i32) -> (i32, i32, i32, i32) {
    %c0_i32 = arith.constant 0 : i32
    %c0_i32_0 = arith.constant 0 : i32
    %c0_i32_1 = arith.constant 0 : i32
    %c0_i32_2 = arith.constant 0 : i32
    return %arg0, %c0_i32, %c0_i32_0, %c0_i32_1 : i32, i32, i32, i32
  }
  func.func @transform_8(%arg0: i32) -> (i32, i32, i32) {
    %c0_i32 = arith.constant 0 : i32
    %c0_i32_0 = arith.constant 0 : i32
    %c0_i32_1 = arith.constant 0 : i32
    return %arg0, %c0_i32, %c0_i32_0 : i32, i32, i32
  }
  func.func @transform_9(%arg0: i32) -> (i32, i32, i32) {
    %c0_i32 = arith.constant 0 : i32
    %c0_i32_0 = arith.constant 0 : i32
    %c0_i32_1 = arith.constant 0 : i32
    return %arg0, %c0_i32, %c0_i32_0 : i32, i32, i32
  }
  func.func @transform_10(%arg0: i32) -> (i32, i32, i32) {
    %c0_i32 = arith.constant 0 : i32
    %c0_i32_0 = arith.constant 0 : i32
    %c0_i32_1 = arith.constant 0 : i32
    return %arg0, %c0_i32, %c0_i32_0 : i32, i32, i32
  }
  func.func @transform_11(%arg0: i32) -> (i32, i32, i32) {
    %c0_i32 = arith.constant 0 : i32
    %c0_i32_0 = arith.constant 0 : i32
    %c0_i32_1 = arith.constant 0 : i32
    return %arg0, %c0_i32, %c0_i32_0 : i32, i32, i32
  }
  func.func @transform_12(%arg0: i32) -> (i32, i32) {
    %c0_i32 = arith.constant 0 : i32
    %c0_i32_0 = arith.constant 0 : i32
    %c0_i32_1 = arith.constant 0 : i32
    return %c0_i32, %c0_i32_0 : i32, i32
  }
}

</mosaic_0001>

<bundles_post_ra>
// kernel: flan_t5_encode.1
= control target key start
LH: loop header
LB: loop body
LE: loop exit
PB: predicated region body
PF: predicated region fallthrough
CT: control target
= control target key end

     0   :  { %s2893_s0 = inlined_call_operand.vmem [shape: f32[16,32], index: 0, kind: input, shape index: {}]   ;;  %s2894_s1 = inlined_call_operand.vmem [shape: f32[8,8,8], index: 1, kind: input, shape index: {}]   ;;  %s2895_s2 = inlined_call_operand.vmem [shape: f32[1,32], index: 2, kind: input, shape index: {}]   ;;  %s2896_s3 = inlined_call_operand.vmem [shape: f32[2,1,32], index: 3, kind: input, shape index: {}]   ;;  %s2897_s4 = inlined_call_operand.vmem [shape: f32[2,8,32,8], index: 4, kind: input, shape index: {}]   ;;  %s2898_s5 = inlined_call_operand.vmem [shape: f32[2,8,32,8], index: 5, kind: input, shape index: {}]   ;;  %s2899_s6 = inlined_call_operand.vmem [shape: f32[2,8,32,8], index: 6, kind: input, shape index: {}]   ;;  %s2900_s7 = inlined_call_operand.vmem [shape: f32[2,8,8,32], index: 7, kind: input, shape index: {}]   ;;  %s2901_s8 = inlined_call_operand.vmem [shape: f32[2,1,32], index: 8, kind: input, shape index: {}]   ;;  %s2902_s9 = inlined_call_operand.vmem [shape: f32[2,32,64], index: 9, kind: input, shape index: {}]   ;;  %s2903_s10 = inlined_call_operand.vmem [shape: f32[2,32,64], index: 10, kind: input, shape index: {}]   ;;  %s2904_s11 = inlined_call_operand.vmem [shape: f32[2,64,32], index: 11, kind: input, shape index: {}]   ;;  %s2905_s12 = inlined_call_operand.hbm [shape: f32[16,32], index: 12, kind: output, shape index: {}]  }
   0x1   :  { %2907 = sst [smem:[#allocation7_spill]] %s2897_s4 }
   0x2   :  { %2908 = sst [smem:[#allocation8_spill]] %s2898_s5 }
   0x3   :  { %2909 = sst [smem:[#allocation9_spill]] %s2899_s6 }
   0x4   :  { %17 = vsyncpa [#allocation4], 0  ;;  %s2507_s21 = smov 0  }
   0x5 LB: > { %2910 = sst [smem:[#allocation6_spill]] %s2436_s21  ;;  %s2513_s22 = sadd.s32 4294967295, %s2436_s21   ;;  %s2436_s21 = sphi %s2507_s21, %s23_s21  }
   0x6   : > { %p2237_p0 = scmp.ge.s32.totalorder %s2436_s21, 1  ;;  %p434_p1 = scmp.lt.s32.totalorder %s2436_s21, 3 }
   0x8   : > { %p435_p2 = pnand %p2237_p0, %p434_p1 }
   0x9   : > { %p507_p3 = scmp.lt.s32.totalorder (!%p435_p2), %s2513_s22, 1  ;;  %s2911_s4 = sld [smem:[#allocation7_spill]] (!%p435_p2) }
   0xa   : > { %438 = sbr.rel (%p435_p2) target bundleno = 1594 (0x63a), region = 68  ;;  %s2912_s5 = sld [smem:[#allocation8_spill]] (!%p435_p2) }
   0xb   : > { %s2913_s6 = sld [smem:[#allocation9_spill]] (!%p435_p2)  ;;  %p2252_p4 = scmp.ne.s32.totalorder (!%p435_p2), %s2513_s22, 0 }
   0xf   : > { %s2519_s23 = scalar_select %p507_p3, %s2513_s22, 1 }
  0x11   : > { %s2320_s27 = sshll.u32 %s2519_s23, 8  ;;  %s2323_s19 = sshll.u32 %s2519_s23, 6 }
  0x12   : > { %s2529_s30 = scalar_lea.vmem %s2911_s4, %s2320_s27  ;;  %s2534_s15 = scalar_lea.vmem %s2912_s5, %s2320_s27 }
  0x13   : > { %s2539_s18 = scalar_lea.vmem %s2913_s6, %s2320_s27  ;;  %s2545_s25 = scalar_lea.vmem %s2900_s7, %s2323_s19 }
  0x14   : > { %s532_s29 = scalar_lea.vmem %s2901_s8, %s2519_s23  ;;  %s2324_s4 = sshll.u32 %s2519_s23, 5 }
  0x15   : > { %s2555_s14 = scalar_lea.vmem %s2904_s11, %s2323_s19  ;;  %s2560_s27 = scalar_lea.vmem %s2902_s9, %s2324_s4 }
  0x16   : > { %s2565_s20 = scalar_lea.vmem %s2903_s10, %s2324_s4  ;;  %551 = sbr.rel (%p2252_p4) target bundleno = 30 (0x1e), region = 72 }
  0x1b   : > { %v552_v0 = vld [vmem:[%s2893_s0] sm:$0xff]  ;;  %vm554_vm0 = vcmask 261120   ;;  %v553_v1 = vld [vmem:[%s2893_s0 + $0x8] sm:$0xff] }
  0x1c   : > { %555 = vst.msk [vmem:[#allocation2] sm:$0xff] %vm554_vm0, %v552_v0 }
  0x1d   : > { %556 = vst.msk [vmem:[#allocation2 + $0x8] sm:$0xff] %vm554_vm0, %v553_v1 }
  0x1e PF: > { %vm561_vm1 = vcmask 261120   ;;  %v2438_v8 = vmov 32.0   ;;  %v610_v12 = vld [vmem:[%s2529_s30 + $0x18] sm:$0xff]  ;;  %v609_v15 = vld [vmem:[%s2529_s30 + $0x10] sm:$0xff]  ;;  %v608_v19 = vld [vmem:[%s2529_s30 + $0x8] sm:$0xff]  ;;  %s2914_s6 = scalar_lea.vmem %s2896_s3, %s2519_s23  ;;  %vm1197_vm9 = vcmask 64512  }
  0x1f   : > { %2347 = vrcp.f32 %v2438_v8  ;;  %v618_v13 = vld [vmem:[%s2529_s30 + $0x58] sm:$0xff]  ;;  %654 = vmatpush.msra.mxu0 %v610_v12  ;;  %v617_v16 = vld [vmem:[%s2529_s30 + $0x50] sm:$0xff]  ;;  %v616_v20 = vld [vmem:[%s2529_s30 + $0x48] sm:$0xff]  ;;  %vm2014_vm0 = vcmask 523264   ;;  %p2315_p5 = scmp.ne.s32.totalorder %s2513_s22, 1 }
  0x20   : > { %v634_v14 = vld [vmem:[%s2529_s30 + $0xd8] sm:$0xff]  ;;  %697 = vmatpush.msra.mxu3 %v618_v13  ;;  %v633_v17 = vld [vmem:[%s2529_s30 + $0xd0] sm:$0xff]  ;;  %v632_v21 = vld [vmem:[%s2529_s30 + $0xc8] sm:$0xff] }
  0x21   : > { %777 = vmatpush.msra.mxu2 %v634_v14  ;;  %655 = vmatpush.msra.mxu0 %v609_v15  ;;  %v607_v22 = vld [vmem:[%s2529_s30] sm:$0xff]  ;;  %v614_v26 = vld [vmem:[%s2529_s30 + $0x38] sm:$0xff]  ;;  %v613_v31 = vld [vmem:[%s2529_s30 + $0x30] sm:$0xff] }
  0x22   : > { %698 = vmatpush.msra.mxu3 %v617_v16  ;;  %v615_v23 = vld [vmem:[%s2529_s30 + $0x40] sm:$0xff]  ;;  %v622_v27 = vld [vmem:[%s2529_s30 + $0x78] sm:$0xff]  ;;  %677 = vmatpush.msra.mxu1 %v614_v26  ;;  %v621_v32 = vld [vmem:[%s2529_s30 + $0x70] sm:$0xff] }
  0x23   : > { %v2574_v2 = vld [vmem:[#allocation2] sm:$0xff]  ;;  %778 = vmatpush.msra.mxu2 %v633_v17  ;;  %656 = vmatpush.msra.mxu0 %v608_v19  ;;  %v626_v28 = vld [vmem:[%s2529_s30 + $0x98] sm:$0xff]  ;;  %v625_v33 = vld [vmem:[%s2529_s30 + $0x90] sm:$0xff] }
  0x24   : > { %v559_v3 = vmul.f32 %v2574_v2, %v2574_v2  ;;  %v2578_v4 = vld [vmem:[#allocation2 + $0x8] sm:$0xff]  ;;  %699 = vmatpush.msra.mxu3 %v616_v20  ;;  %v631_v24 = vld [vmem:[%s2529_s30 + $0xc0] sm:$0xff]  ;;  %v816_v29 = vld [vmem:[%s2534_s15 + $0x58] sm:$0xff]  ;;  %678 = vmatpush.msra.mxu1 %v613_v31 }
  0x25   : > { %v560_v6 = vmul.f32 %v2578_v4, %v2578_v4  ;;  %v2348_v9 = vpop.eup %2347  ;;  %779 = vmatpush.msra.mxu2 %v632_v21  ;;  %657 = vmatpush.msra.mxu0 %v607_v22  ;;  %v815_v34 = vld [vmem:[%s2534_s15 + $0x50] sm:$0xff]  ;;  %v612_v36 = vld [vmem:[%s2529_s30 + $0x28] sm:$0xff]  ;;  %v611_v41 = vld [vmem:[%s2529_s30 + $0x20] sm:$0xff] }
  0x26   : > { %v562_v5 = vsel %vm561_vm1, %v559_v3, 0.0  ;;  %v569_v10 = vmul.f32 32.0, %v2348_v9  ;;  %700 = vmatpush.msra.mxu3 %v615_v23  ;;  %vm573_vm2 = vweird.f32 %v2348_v9  ;;  %v620_v37 = vld [vmem:[%s2529_s30 + $0x68] sm:$0xff]  ;;  %679 = vmatpush.msra.mxu1 %v612_v36  ;;  %v619_v42 = vld [vmem:[%s2529_s30 + $0x60] sm:$0xff]  ;;  %v630_v46 = vld [vmem:[%s2529_s30 + $0xb8] sm:$0xff] }
  0x27   : > { %563 = vadd.xlane.f32.xlu0 %v562_v5  ;;  %v565_v7 = vsel %vm561_vm1, %v560_v6, 0.0  ;;  %780 = vmatpush.msra.mxu2 %v631_v24  ;;  %v624_v38 = vld [vmem:[%s2529_s30 + $0x88] sm:$0xff]  ;;  %v623_v43 = vld [vmem:[%s2529_s30 + $0x80] sm:$0xff]  ;;  %v629_v47 = vld [vmem:[%s2529_s30 + $0xb0] sm:$0xff] }
  0x28   : > { %v570_v11 = vsub.f32 1.0, %v569_v10  ;;  %717 = vmatpush.msrb.mxu3 %v622_v27  ;;  %737 = vmatpush.msrb.mxu0 %v626_v28  ;;  %v814_v40 = vld [vmem:[%s2534_s15 + $0x48] sm:$0xff]  ;;  %v813_v44 = vld [vmem:[%s2534_s15 + $0x40] sm:$0xff]  ;;  %v638_v5 = vld [vmem:[%s2529_s30 + $0xf8] sm:$0xff] }
  0x29   : > { %889 = vmatpush.msrb.mxu2 %v816_v29  ;;  %680 = vmatpush.msra.mxu1 %v611_v41  ;;  %v628_v48 = vld [vmem:[%s2529_s30 + $0xa8] sm:$0xff]  ;;  %v627_v50 = vld [vmem:[%s2529_s30 + $0xa0] sm:$0xff]  ;;  %v832_v8 = vld [vmem:[%s2534_s15 + $0xd8] sm:$0xff] }
  0x2a   : > { %v571_v18 = vmul.f32 %v2348_v9, %v570_v11  ;;  %718 = vmatpush.msrb.mxu3 %v621_v32  ;;  %738 = vmatpush.msrb.mxu0 %v625_v33  ;;  %v2345_v61 = vld [vmem:[%s2914_s6] ss:$0 sm:$0xff]  ;;  %v807_v11 = vld [vmem:[%s2534_s15 + $0x10] sm:$0xff]  ;;  %v636_v13 = vld [vmem:[%s2529_s30 + $0xe8] sm:$0xff] }
  0x2b   : > { %890 = vmatpush.msrb.mxu2 %v815_v34  ;;  %757 = vmatpush.msrb.mxu1 %v630_v46  ;;  %v831_v12 = vld [vmem:[%s2534_s15 + $0xd0] sm:$0xff]  ;;  %v806_v15 = vld [vmem:[%s2534_s15 + $0x8] sm:$0xff]  ;;  %v805_v20 = vld [vmem:[%s2534_s15] sm:$0xff] }
  0x2c   : > { %v572_v25 = vadd.f32 %v2348_v9, %v571_v18  ;;  %719 = vmatpush.msrb.mxu3 %v620_v37  ;;  %739 = vmatpush.msrb.mxu0 %v624_v38  ;;  %v830_v16 = vld [vmem:[%s2534_s15 + $0xc8] sm:$0xff]  ;;  %v635_v18 = vld [vmem:[%s2529_s30 + $0xe0] sm:$0xff]  ;;  %v812_v22 = vld [vmem:[%s2534_s15 + $0x38] sm:$0xff] }
  0x2d   : > { %891 = vmatpush.msrb.mxu2 %v814_v40  ;;  %758 = vmatpush.msrb.mxu1 %v629_v47  ;;  %v829_v21 = vld [vmem:[%s2534_s15 + $0xc0] sm:$0xff]  ;;  %v820_v23 = vld [vmem:[%s2534_s15 + $0x78] sm:$0xff]  ;;  %v811_v26 = vld [vmem:[%s2534_s15 + $0x30] sm:$0xff] }
  0x2e   : > { %v2600_v30 = vsel %vm573_vm2, %v2348_v9, %v572_v25  ;;  %720 = vmatpush.msrb.mxu3 %v619_v42  ;;  %740 = vmatpush.msrb.mxu0 %v623_v43  ;;  %v637_v9 = vld [vmem:[%s2529_s30 + $0xf0] sm:$0xff]  ;;  %v824_v24 = vld [vmem:[%s2534_s15 + $0x98] sm:$0xff]  ;;  %v810_v31 = vld [vmem:[%s2534_s15 + $0x28] sm:$0xff] }
  0x2f   : > { %566 = vadd.xlane.f32.xlu0 %v565_v7  ;;  %892 = vmatpush.msrb.mxu2 %v813_v44  ;;  %v808_v7 = vld [vmem:[%s2534_s15 + $0x18] sm:$0xff]  ;;  %v819_v27 = vld [vmem:[%s2534_s15 + $0x70] sm:$0xff]  ;;  %v818_v32 = vld [vmem:[%s2534_s15 + $0x68] sm:$0xff] }
  0x30   : > { %759 = vmatpush.msrb.mxu1 %v628_v48  ;;  %v1008_v25 = vld [vmem:[%s2539_s18 + $0x58] sm:$0xff]  ;;  %v823_v28 = vld [vmem:[%s2534_s15 + $0x90] sm:$0xff]  ;;  %v822_v33 = vld [vmem:[%s2534_s15 + $0x88] sm:$0xff] }
  0x31   : > { %v1007_v29 = vld [vmem:[%s2539_s18 + $0x50] sm:$0xff]  ;;  %v1006_v34 = vld [vmem:[%s2539_s18 + $0x48] sm:$0xff]  ;;  %v817_v36 = vld [vmem:[%s2534_s15 + $0x60] sm:$0xff] }
  0x32   : > { %760 = vmatpush.msrb.mxu1 %v627_v50  ;;  %v821_v37 = vld [vmem:[%s2534_s15 + $0x80] sm:$0xff]  ;;  %v836_v40 = vld [vmem:[%s2534_s15 + $0xf8] sm:$0xff]  ;;  %v827_v43 = vld [vmem:[%s2534_s15 + $0xb0] sm:$0xff] }
  0x33   : > { %v1005_v38 = vld [vmem:[%s2539_s18 + $0x40] sm:$0xff]  ;;  %v1000_v41 = vld [vmem:[%s2539_s18 + $0x18] sm:$0xff]  ;;  %v835_v44 = vld [vmem:[%s2534_s15 + $0xf0] sm:$0xff] }
  0x34   : > { %v1024_v42 = vld [vmem:[%s2539_s18 + $0xd8] sm:$0xff]  ;;  %v1023_v46 = vld [vmem:[%s2539_s18 + $0xd0] sm:$0xff]  ;;  %v826_v47 = vld [vmem:[%s2534_s15 + $0xa8] sm:$0xff] }
  0x35   : > { %v834_v48 = vld [vmem:[%s2534_s15 + $0xe8] sm:$0xff] }
  0x36   : > { %v1022_v50 = vld [vmem:[%s2539_s18 + $0xc8] sm:$0xff] }
  0x9a   : > { %v564_v35 = vpop.xlane.xlu0 %563 }
  0x9b   : > { %v575_v39 = vmul.f32 %v2600_v30, %v564_v35  ;;  %v809_v35 = vld [vmem:[%s2534_s15 + $0x20] sm:$0xff] }
  0x9d   : > { %v577_v45 = vadd.f32 1e-06, %v575_v39  ;;  %v828_v39 = vld [vmem:[%s2534_s15 + $0xb8] sm:$0xff] }
  0x9f   : > { %2349 = vrsqrt.f32 %v577_v45  ;;  %vm585_vm4 = vweird.f32 %v577_v45 }
  0xa2   : > { %v567_v49 = vpop.xlane.xlu0 %566 }
  0xa3   : > { %v576_v51 = vmul.f32 %v2600_v30, %v567_v49  ;;  %v998_v49 = vld [vmem:[%s2539_s18 + $0x8] sm:$0xff] }
  0xa5   : > { %v2350_v52 = vpop.eup %2349  ;;  %v578_v53 = vadd.f32 1e-06, %v576_v51  ;;  %v825_v51 = vld [vmem:[%s2534_s15 + $0xa0] sm:$0xff] }
  0xa6   : > { %v580_v54 = vmul.f32 %v2350_v52, %v577_v45  ;;  %vm586_vm3 = vweird.f32 %v2350_v52  ;;  %v999_v45 = vld [vmem:[%s2539_s18 + $0x10] sm:$0xff] }
  0xa7   : > { %2351 = vrsqrt.f32 %v578_v53  ;;  %vm587_vm5 = vmor %vm585_vm4, %vm586_vm3  ;;  %vm595_vm7 = vweird.f32 %v578_v53 }
  0xa8   : > { %v581_v55 = vmul.f32 %v2350_v52, %v580_v54  ;;  %v1021_v54 = vld [vmem:[%s2539_s18 + $0xc0] sm:$0xff] }
  0xaa   : > { %v582_v56 = vmul.f32 0.5, %v581_v55  ;;  %v1004_v55 = vld [vmem:[%s2539_s18 + $0x38] sm:$0xff] }
  0xac   : > { %v583_v57 = vsub.f32 1.5, %v582_v56  ;;  %v1012_v56 = vld [vmem:[%s2539_s18 + $0x78] sm:$0xff] }
  0xad   : > { %v2352_v58 = vpop.eup %2351 }
  0xae   : > { %v584_v59 = vmul.f32 %v2350_v52, %v583_v57  ;;  %v590_v60 = vmul.f32 %v2352_v58, %v578_v53  ;;  %vm596_vm6 = vweird.f32 %v2352_v58  ;;  %v997_v53 = vld [vmem:[%s2539_s18] sm:$0xff]  ;;  %v1016_v57 = vld [vmem:[%s2539_s18 + $0x98] sm:$0xff] }
  0xaf   : > { %vm597_vm8 = vmor %vm595_vm7, %vm596_vm6 }
  0xb0   : > { %v588_v62 = vsel %vm587_vm5, %v2350_v52, %v584_v59  ;;  %v591_v63 = vmul.f32 %v2352_v58, %v590_v60  ;;  %v833_v52 = vld [vmem:[%s2534_s15 + $0xe0] sm:$0xff]  ;;  %v1011_v59 = vld [vmem:[%s2539_s18 + $0x70] sm:$0xff] }
  0xb1   : > { %v599_v0 = vmul.f32 %v588_v62, %v2574_v2  ;;  %v1015_v60 = vld [vmem:[%s2539_s18 + $0x90] sm:$0xff]  ;;  %v1010_v62 = vld [vmem:[%s2539_s18 + $0x68] sm:$0xff] }
  0xb2   : > { %v592_v1 = vmul.f32 0.5, %v591_v63  ;;  %v1014_v63 = vld [vmem:[%s2539_s18 + $0x88] sm:$0xff] }
  0xb3   : > { %v2626_v3 = vmul.f32 %v2345_v61, %v599_v0  ;;  %v1001_v0 = vld [vmem:[%s2539_s18 + $0x20] sm:$0xff] }
  0xb4   : > { %v593_v6 = vsub.f32 1.5, %v592_v1  ;;  %v1009_v1 = vld [vmem:[%s2539_s18 + $0x60] sm:$0xff] }
  0xb5   : > { %2253 = vmatmul.msk.f32.vlgmr.msra.gmra.mxu0 %vm561_vm1, %v2626_v3  ;;  %2255 = vmatmul.msk.f32.vlgmr.msra.gmra.mxu3 %vm561_vm1, %v2626_v3 }
  0xb6   : > { %v594_v10 = vmul.f32 %v2352_v58, %v593_v6  ;;  %2259 = vmatmul.msk.f32.vlgmr.msra.gmra.mxu2 %vm561_vm1, %v2626_v3  ;;  %797 = vmatpush.msra.mxu3 %v638_v5  ;;  %v1020_v5 = vld [vmem:[%s2539_s18 + $0xb8] sm:$0xff]  ;;  %v1013_v6 = vld [vmem:[%s2539_s18 + $0x80] sm:$0xff] }
  0xb7   : > { %849 = vmatpush.msra.mxu0 %v808_v7  ;;  %969 = vmatpush.msra.mxu2 %v832_v8  ;;  %v1028_v7 = vld [vmem:[%s2539_s18 + $0xf8] sm:$0xff]  ;;  %v1019_v8 = vld [vmem:[%s2539_s18 + $0xb0] sm:$0xff] }
  0xb8   : > { %v598_v14 = vsel %vm597_vm8, %v2352_v58, %v594_v10  ;;  %798 = vmatpush.msra.mxu3 %v637_v9  ;;  %v1003_v58 = vld [vmem:[%s2539_s18 + $0x30] sm:$0xff]  ;;  %v1018_v10 = vld [vmem:[%s2539_s18 + $0xa8] sm:$0xff] }
  0xb9   : > { %v600_v17 = vmul.f32 %v598_v14, %v2578_v4  ;;  %850 = vmatpush.msra.mxu0 %v807_v11  ;;  %970 = vmatpush.msra.mxu2 %v831_v12  ;;  %v1027_v9 = vld [vmem:[%s2539_s18 + $0xf0] sm:$0xff]  ;;  %v1026_v11 = vld [vmem:[%s2539_s18 + $0xe8] sm:$0xff]  ;;  %v1017_v12 = vld [vmem:[%s2539_s18 + $0xa0] sm:$0xff] }
  0xba   : > { %799 = vmatpush.msra.mxu3 %v636_v13  ;;  %v1025_v13 = vld [vmem:[%s2539_s18 + $0xe0] sm:$0xff] }
  0xbb   : > { %v2645_v19 = vmul.f32 %v2345_v61, %v600_v17  ;;  %851 = vmatpush.msra.mxu0 %v806_v15  ;;  %971 = vmatpush.msra.mxu2 %v830_v16  ;;  %v1002_v61 = vld [vmem:[%s2539_s18 + $0x28] sm:$0xff] }
  0xbc   : > { %800 = vmatpush.msra.mxu3 %v635_v18 }
  0xbd   : > { %2254 = vmatmul.msk.f32.vlgmr.msra.gmra.mxu1 %vm561_vm1, %v2645_v19  ;;  %2256 = vmatmul.msk.f32.vlgmr.msrb.gmra.mxu3 %vm561_vm1, %v2645_v19 }
  0xbe   : > { %2257 = vmatmul.msk.f32.vlgmr.msrb.gmra.mxu0 %vm561_vm1, %v2626_v3  ;;  %2263 = vmatmul.msk.f32.vlgmr.msrb.gmra.mxu2 %vm561_vm1, %v2626_v3 }
  0xbf   : > { %852 = vmatpush.msra.mxu0 %v805_v20  ;;  %972 = vmatpush.msra.mxu2 %v829_v21 }
  0xc0   : > { %869 = vmatpush.msra.mxu1 %v812_v22  ;;  %909 = vmatpush.msrb.mxu3 %v820_v23 }
  0xc1   : > { %929 = vmatpush.msrb.mxu0 %v824_v24  ;;  %1081 = vmatpush.msrb.mxu2 %v1008_v25 }
  0xc2   : > { %870 = vmatpush.msra.mxu1 %v811_v26  ;;  %910 = vmatpush.msrb.mxu3 %v819_v27 }
  0xc3   : > { %930 = vmatpush.msrb.mxu0 %v823_v28  ;;  %1082 = vmatpush.msrb.mxu2 %v1007_v29 }
  0xc4   : > { %871 = vmatpush.msra.mxu1 %v810_v31  ;;  %911 = vmatpush.msrb.mxu3 %v818_v32 }
  0xc5   : > { %2258 = vmatmul.msk.f32.vlgmr.msrb.gmra.mxu1 %vm561_vm1, %v2645_v19  ;;  %2260 = vmatmul.msk.f32.vlgmr.msra.gmra.mxu3 %vm561_vm1, %v2645_v19 }
  0xc6   : > { %2261 = vmatmul.msk.f32.vlgmr.msra.gmra.mxu0 %vm561_vm1, %v2626_v3  ;;  %2267 = vmatmul.msk.f32.vlgmr.msra.gmra.mxu2 %vm561_vm1, %v2626_v3 }
  0xc7   : > { %931 = vmatpush.msrb.mxu0 %v822_v33  ;;  %1083 = vmatpush.msrb.mxu2 %v1006_v34 }
  0xc8   : > { %872 = vmatpush.msra.mxu1 %v809_v35  ;;  %912 = vmatpush.msrb.mxu3 %v817_v36 }
  0xc9   : > { %932 = vmatpush.msrb.mxu0 %v821_v37  ;;  %1084 = vmatpush.msrb.mxu2 %v1005_v38  ;;  %v1191_v38 = vld [vmem:[%s2894_s1 + $0x10] sm:$0xff] }
  0xca   : > { %949 = vmatpush.msrb.mxu1 %v828_v39  ;;  %989 = vmatpush.msra.mxu3 %v836_v40 }
  0xcb   : > { %1041 = vmatpush.msra.mxu0 %v1000_v41  ;;  %1161 = vmatpush.msra.mxu2 %v1024_v42  ;;  %v1195_v42 = vld [vmem:[%s2894_s1 + $0x30] sm:$0xff] }
  0xcc   : > { %950 = vmatpush.msrb.mxu1 %v827_v43  ;;  %990 = vmatpush.msra.mxu3 %v835_v44 }
  0xcd   : > { %2262 = vmatmul.msk.f32.vlgmr.msra.gmra.mxu1 %vm561_vm1, %v2645_v19  ;;  %2264 = vmatmul.msk.f32.vlgmr.msrb.gmra.mxu3 %vm561_vm1, %v2645_v19 }
  0xce   : > { %2265 = vmatmul.msk.f32.vlgmr.msrb.gmra.mxu0 %vm561_vm1, %v2626_v3  ;;  %2271 = vmatmul.msk.f32.vlgmr.msrb.gmra.mxu2 %vm561_vm1, %v2626_v3 }
  0xcf   : > { %1042 = vmatpush.msra.mxu0 %v999_v45  ;;  %1162 = vmatpush.msra.mxu2 %v1023_v46 }
  0xd0   : > { %951 = vmatpush.msrb.mxu1 %v826_v47  ;;  %991 = vmatpush.msra.mxu3 %v834_v48  ;;  %v1189_v47 = vld [vmem:[%s2894_s1] sm:$0xff]  ;;  %v1192_v48 = vld [vmem:[%s2894_s1 + $0x18] sm:$0xff] }
  0xd1   : > { %1043 = vmatpush.msra.mxu0 %v998_v49  ;;  %1163 = vmatpush.msra.mxu2 %v1022_v50 }
  0xd2   : > { %952 = vmatpush.msrb.mxu1 %v825_v51  ;;  %992 = vmatpush.msra.mxu3 %v833_v52 }
  0xd3   : > { %1044 = vmatpush.msra.mxu0 %v997_v53  ;;  %1164 = vmatpush.msra.mxu2 %v1021_v54  ;;  %v1190_v54 = vld [vmem:[%s2894_s1 + $0x8] sm:$0xff] }
  0xd4   : > { %1061 = vmatpush.msra.mxu1 %v1004_v55  ;;  %1101 = vmatpush.msrb.mxu3 %v1012_v56  ;;  %v1193_v56 = vld [vmem:[%s2894_s1 + $0x20] sm:$0xff] }
  0xd5   : > { %2266 = vmatmul.msk.f32.vlgmr.msrb.gmra.mxu1 %vm561_vm1, %v2645_v19  ;;  %2268 = vmatmul.msk.f32.vlgmr.msra.gmra.mxu3 %vm561_vm1, %v2645_v19 }
  0xd6   : > { %2269 = vmatmul.msk.f32.vlgmr.msra.gmra.mxu0 %vm561_vm1, %v2626_v3  ;;  %2275 = vmatmul.msk.f32.vlgmr.msra.gmra.mxu2 %vm561_vm1, %v2626_v3 }
  0xd7   : > { %1121 = vmatpush.msrb.mxu0 %v1016_v57  ;;  %1062 = vmatpush.msra.mxu1 %v1003_v58  ;;  %v1196_v58 = vld [vmem:[%s2894_s1 + $0x38] sm:$0xff] }
  0xd8   : > { %1102 = vmatpush.msrb.mxu3 %v1011_v59 }
  0xd9   : > { %1122 = vmatpush.msrb.mxu0 %v1015_v60  ;;  %1063 = vmatpush.msra.mxu1 %v1002_v61 }
  0xda   : > { %1103 = vmatpush.msrb.mxu3 %v1010_v62 }
  0xdb   : > { %1123 = vmatpush.msrb.mxu0 %v1014_v63  ;;  %1064 = vmatpush.msra.mxu1 %v1001_v0 }
  0xdc   : > { %1104 = vmatpush.msrb.mxu3 %v1009_v1  ;;  %v1194_v1 = vld [vmem:[%s2894_s1 + $0x28] sm:$0xff] }
  0xdd   : > { %1141 = vmatpush.msrb.mxu1 %v1020_v5  ;;  %1124 = vmatpush.msrb.mxu0 %v1013_v6 }
  0xde   : > { %2270 = vmatmul.msk.f32.vlgmr.msra.gmra.mxu1 %vm561_vm1, %v2645_v19  ;;  %2272 = vmatmul.msk.f32.vlgmr.msrb.gmra.mxu3 %vm561_vm1, %v2645_v19 }
  0xdf   : > { %2273 = vmatmul.msk.f32.vlgmr.msrb.gmra.mxu0 %vm561_vm1, %v2626_v3  ;;  %1181 = vmatpush.msra.mxu3 %v1028_v7 }
  0xe0   : > { %1142 = vmatpush.msrb.mxu1 %v1019_v8 }
  0xe1   : > { %1182 = vmatpush.msra.mxu3 %v1027_v9 }
  0xe2   : > { %1143 = vmatpush.msrb.mxu1 %v1018_v10 }
  0xe3   : > { %1183 = vmatpush.msra.mxu3 %v1026_v11 }
  0xe4   : > { %1144 = vmatpush.msrb.mxu1 %v1017_v12 }
  0xe5   : > { %1184 = vmatpush.msra.mxu3 %v1025_v13 }
  0xe6   : > { %2274 = vmatmul.msk.f32.vlgmr.msrb.gmra.mxu1 %vm561_vm1, %v2645_v19  ;;  %2276 = vmatmul.msk.f32.vlgmr.msra.gmra.mxu3 %vm561_vm1, %v2645_v19 }
 0x132   : > { %v659_v14 = vpop.f32.mrf.mxu0 }
 0x138   : > { %v702_v3 = vpop.f32.mrf.mxu3 }
 0x139   : > { %v782_v15 = vpop.f32.mrf.mxu2 }
 0x13a   : > { %v682_v16 = vpop.f32.mrf.mxu1 }
 0x13b   : > { %v742_v17 = vpop.f32.mrf.mxu0 }
 0x140   : > { %v722_v18 = vpop.f32.mrf.mxu3 }
 0x141   : > { %v894_v20 = vpop.f32.mrf.mxu2 }
 0x142   : > { %2281 = vmatpush.xpose.msk.msrb.mxu2 %vm1197_vm9, %v894_v20  ;;  %v762_v21 = vpop.f32.mrf.mxu1 }
 0x143   : > { %v854_v22 = vpop.f32.mrf.mxu0 }
 0x144   : > { %2277 = vmatpush.xpose.msk.msra.mxu0 %vm1197_vm9, %v854_v22 }
 0x145   : > { %2282 = vmatmul.msk.f32.vlgmr.msrb.gmra.mxu2 %vm1197_vm9, %v702_v3 }
 0x147   : > { %2278 = vmatmul.msk.f32.vlgmr.msra.gmra.mxu0 %vm1197_vm9, %v659_v14 }
 0x148   : > { %v802_v23 = vpop.f32.mrf.mxu3 }
 0x149   : > { %v974_v19 = vpop.f32.mrf.mxu2 }
 0x14a   : > { %2289 = vmatpush.xpose.msk.msra.mxu2 %vm1197_vm9, %v974_v19  ;;  %v874_v24 = vpop.f32.mrf.mxu1 }
 0x14b   : > { %v934_v25 = vpop.f32.mrf.mxu0  ;;  %2279 = vmatpush.xpose.msk.msra.mxu1 %vm1197_vm9, %v874_v24 }
 0x14c   : > { %2285 = vmatpush.xpose.msk.msrb.mxu0 %vm1197_vm9, %v934_v25 }
 0x14d   : > { %2290 = vmatmul.msk.f32.vlgmr.msra.gmra.mxu2 %vm1197_vm9, %v782_v15 }
 0x14e   : > { %2280 = vmatmul.msk.f32.vlgmr.msra.gmra.mxu1 %vm1197_vm9, %v682_v16 }
 0x14f   : > { %2286 = vmatmul.msk.f32.vlgmr.msrb.gmra.mxu0 %vm1197_vm9, %v742_v17 }
 0x150   : > { %v914_v26 = vpop.f32.mrf.mxu3 }
 0x151   : > { %v1086_v27 = vpop.f32.mrf.mxu2  ;;  %2283 = vmatpush.xpose.msk.msrb.mxu3 %vm1197_vm9, %v914_v26 }
 0x152   : > { %1558 = vmatpush.msrb.mxu2 %v1086_v27  ;;  %v954_v28 = vpop.f32.mrf.mxu1 }
 0x153   : > { %v1046_v29 = vpop.f32.mrf.mxu0  ;;  %2287 = vmatpush.xpose.msk.msrb.mxu1 %vm1197_vm9, %v954_v28 }
 0x154   : > { %1512 = vmatpush.msra.mxu0 %v1046_v29  ;;  %2284 = vmatmul.msk.f32.vlgmr.msrb.gmra.mxu3 %vm1197_vm9, %v722_v18 }
 0x156   : > { %2288 = vmatmul.msk.f32.vlgmr.msrb.gmra.mxu1 %vm1197_vm9, %v762_v21 }
 0x158   : > { %v994_v31 = vpop.f32.mrf.mxu3 }
 0x159   : > { %v1166_v32 = vpop.f32.mrf.mxu2  ;;  %2291 = vmatpush.xpose.msk.msra.mxu3 %vm1197_vm9, %v994_v31 }
 0x15a   : > { %1650 = vmatpush.msra.mxu2 %v1166_v32 }
 0x15b   : > { %v1066_v33 = vpop.f32.mrf.mxu1 }
 0x15c   : > { %v1126_v34 = vpop.f32.mrf.mxu0  ;;  %1535 = vmatpush.msra.mxu1 %v1066_v33  ;;  %2292 = vmatmul.msk.f32.vlgmr.msra.gmra.mxu3 %vm1197_vm9, %v802_v23 }
 0x15d   : > { %1604 = vmatpush.msrb.mxu0 %v1126_v34 }
 0x161   : > { %v1106_v35 = vpop.f32.mrf.mxu3 }
 0x162   : > { %1581 = vmatpush.msrb.mxu3 %v1106_v35 }
 0x163   : > { %v1146_v36 = vpop.f32.mrf.mxu1 }
 0x164   : > { %1627 = vmatpush.msrb.mxu1 %v1146_v36 }
 0x169   : > { %v1186_v37 = vpop.f32.mrf.mxu3 }
 0x16a   : > { %1673 = vmatpush.msra.mxu3 %v1186_v37 }
 0x1c4   : > { %v1221_v45 = vpop.f32.mrf.mxu0 }
 0x1c5   : > { %v1222_v49 = vadd.f32 %v1221_v45, %v1189_v47 }
 0x1c7   : > { %v1406_v55 = vsel %vm1197_vm9, %v1222_v49, -inf }
 0x1c8   : > { %v1273_v39 = vpop.f32.mrf.mxu2 }
 0x1c9   : > { %v1274_v40 = vadd.f32 %v1273_v39, %v1191_v38 }
 0x1cb   : > { %v1412_v41 = vsel %vm1197_vm9, %v1274_v40, -inf  ;;  %v1247_v52 = vpop.f32.mrf.mxu1 }
 0x1cc   : > { %1413 = vmax.xlane.f32.xlu1 %v1412_v41  ;;  %v1325_v57 = vpop.f32.mrf.mxu0  ;;  %v1248_v59 = vadd.f32 %v1247_v52, %v1190_v54 }
 0x1cd   : > { %v1326_v60 = vadd.f32 %v1325_v57, %v1193_v56 }
 0x1ce   : > { %v1409_v0 = vsel %vm1197_vm9, %v1248_v59, -inf }
 0x1cf   : > { %v1418_v6 = vsel %vm1197_vm9, %v1326_v60, -inf }
 0x1d0   : > { %v1377_v43 = vpop.f32.mrf.mxu2 }
 0x1d1   : > { %v1378_v44 = vadd.f32 %v1377_v43, %v1195_v42 }
 0x1d3   : > { %v1424_v46 = vsel %vm1197_vm9, %v1378_v44, -inf  ;;  %v1351_v5 = vpop.f32.mrf.mxu1 }
 0x1d4   : > { %1425 = vmax.xlane.f32.xlu2 %v1424_v46  ;;  %v1352_v7 = vadd.f32 %v1351_v5, %v1194_v1 }
 0x1d6   : > { %v1421_v8 = vsel %vm1197_vm9, %v1352_v7, -inf }
 0x1d7   : > { %v1299_v50 = vpop.f32.mrf.mxu3 }
 0x1d8   : > { %v1300_v51 = vadd.f32 %v1299_v50, %v1192_v48 }
 0x1da   : > { %v1415_v53 = vsel %vm1197_vm9, %v1300_v51, -inf }
 0x1db   : > { %1416 = vmax.xlane.f32.xlu1 %v1415_v53 }
 0x1dc   : > { %1407 = vmax.xlane.f32.xlu2 %v1406_v55 }
 0x1df   : > { %v1403_v61 = vpop.f32.mrf.mxu3 }
 0x1e0   : > { %v1404_v62 = vadd.f32 %v1403_v61, %v1196_v58 }
 0x1e2   : > { %v1427_v63 = vsel %vm1197_vm9, %v1404_v62, -inf }
 0x1e3   : > { %1428 = vmax.xlane.f32.xlu0 %v1427_v63  ;;  %1410 = vmax.xlane.f32.xlu1 %v1409_v0 }
 0x1e4   : > { %1419 = vmax.xlane.f32.xlu2 %v1418_v6 }
 0x1eb   : > { %1422 = vmax.xlane.f32.xlu0 %v1421_v8 }
 0x23f   : > { %v1414_v9 = vpop.xlane.xlu1 %1413 }
 0x240   : > { %v1432_v10 = vsub.f32 %v1274_v40, %v1414_v9 }
 0x242   : > { %v1442_v11 = vmul.f32 1.442695, %v1432_v10 }
 0x244   : > { %2353 = vpow2.f32 %v1442_v11 }
 0x247   : > { %v1426_v12 = vpop.xlane.xlu2 %1425 }
 0x248   : > { %v1436_v13 = vsub.f32 %v1378_v44, %v1426_v12  ;;  %v1680_v12 = vld [vmem:[%s2545_s25 + $0x10] sm:$0xff] }
 0x24a   : > { %v2354_v14 = vpop.eup %2353  ;;  %v1450_v3 = vmul.f32 1.442695, %v1436_v13  ;;  %v1684_v13 = vld [vmem:[%s2545_s25 + $0x30] sm:$0xff] }
 0x24b   : > { %v1460_v15 = vsel %vm1197_vm9, %v2354_v14, 0.0 }
 0x24c   : > { %2355 = vpow2.f32 %v1450_v3  ;;  %1461 = vadd.xlane.f32.xlu1 %v1460_v15  ;;  %v1681_v3 = vld [vmem:[%s2545_s25 + $0x18] sm:$0xff]  ;;  %v1679_v15 = vld [vmem:[%s2545_s25 + $0x8] sm:$0xff] }
 0x24e   : > { %v1417_v16 = vpop.xlane.xlu1 %1416 }
 0x24f   : > { %v1408_v17 = vpop.xlane.xlu2 %1407  ;;  %v1433_v18 = vsub.f32 %v1300_v51, %v1417_v16  ;;  %v1682_v16 = vld [vmem:[%s2545_s25 + $0x20] sm:$0xff] }
 0x250   : > { %v1430_v20 = vsub.f32 %v1222_v49, %v1408_v17  ;;  %v1685_v17 = vld [vmem:[%s2545_s25 + $0x38] sm:$0xff] }
 0x251   : > { %v1444_v21 = vmul.f32 1.442695, %v1433_v18  ;;  %v1683_v18 = vld [vmem:[%s2545_s25 + $0x28] sm:$0xff] }
 0x252   : > { %v2356_v22 = vpop.eup %2355  ;;  %v1438_v23 = vmul.f32 1.442695, %v1430_v20 }
 0x253   : > { %2357 = vpow2.f32 %v1444_v21  ;;  %v1472_v19 = vsel %vm1197_vm9, %v2356_v22, 0.0 }
 0x254   : > { %2359 = vpow2.f32 %v1438_v23  ;;  %1473 = vadd.xlane.f32.xlu0 %v1472_v19 }
 0x256   : > { %v1429_v24 = vpop.xlane.xlu0 %1428  ;;  %v1411_v25 = vpop.xlane.xlu1 %1410 }
 0x257   : > { %v1420_v26 = vpop.xlane.xlu2 %1419  ;;  %v1437_v27 = vsub.f32 %v1404_v62, %v1429_v24  ;;  %v1431_v28 = vsub.f32 %v1248_v59, %v1411_v25 }
 0x258   : > { %v1434_v29 = vsub.f32 %v1326_v60, %v1420_v26 }
 0x259   : > { %v2358_v31 = vpop.eup %2357  ;;  %v1452_v32 = vmul.f32 1.442695, %v1437_v27  ;;  %v1440_v33 = vmul.f32 1.442695, %v1431_v28 }
 0x25a   : > { %v2360_v34 = vpop.eup %2359  ;;  %v1446_v35 = vmul.f32 1.442695, %v1434_v29  ;;  %v1463_v36 = vsel %vm1197_vm9, %v2358_v31, 0.0 }
 0x25b   : > { %2361 = vpow2.f32 %v1452_v32  ;;  %1464 = vadd.xlane.f32.xlu2 %v1463_v36  ;;  %v1454_v37 = vsel %vm1197_vm9, %v2360_v34, 0.0 }
 0x25c   : > { %2363 = vpow2.f32 %v1446_v35  ;;  %1455 = vadd.xlane.f32.xlu1 %v1454_v37 }
 0x25d   : > { %2365 = vpow2.f32 %v1440_v33 }
 0x25e   : > { %v1423_v38 = vpop.xlane.xlu0 %1422 }
 0x25f   : > { %v1435_v39 = vsub.f32 %v1352_v7, %v1423_v38 }
 0x261   : > { %v2362_v40 = vpop.eup %2361  ;;  %v1448_v41 = vmul.f32 1.442695, %v1435_v39 }
 0x262   : > { %v2364_v42 = vpop.eup %2363  ;;  %v1475_v43 = vsel %vm1197_vm9, %v2362_v40, 0.0 }
 0x263   : > { %v2366_v44 = vpop.eup %2365  ;;  %2367 = vpow2.f32 %v1448_v41  ;;  %1476 = vadd.xlane.f32.xlu2 %v1475_v43  ;;  %v1466_v45 = vsel %vm1197_vm9, %v2364_v42, 0.0 }
 0x264   : > { %1467 = vadd.xlane.f32.xlu1 %v1466_v45  ;;  %v1457_v46 = vsel %vm1197_vm9, %v2366_v44, 0.0 }
 0x265   : > { %1458 = vadd.xlane.f32.xlu0 %v1457_v46 }
 0x269   : > { %v2368_v47 = vpop.eup %2367 }
 0x26a   : > { %v1469_v48 = vsel %vm1197_vm9, %v2368_v47, 0.0 }
 0x26b   : > { %1470 = vadd.xlane.f32.xlu2 %v1469_v48 }
 0x2bf   : > { %v1462_v49 = vpop.xlane.xlu1 %1461 }
 0x2c0   : > { %2369 = vrcp.f32 %v1462_v49 }
 0x2c6   : > { %v2370_v50 = vpop.eup %2369 }
 0x2c7   : > { %v1488_v51 = vmul.f32 %v2370_v50, %v2354_v14  ;;  %v1474_v52 = vpop.xlane.xlu0 %1473  ;;  %v1678_v14 = vld [vmem:[%s2545_s25] sm:$0xff] }
 0x2c8   : > { %2371 = vrcp.f32 %v1474_v52 }
 0x2c9   : > { %2295 = vmatmul.msk.f32.vlgmr.msrb.gmra.mxu2 %vm1197_vm9, %v1488_v51 }
 0x2ca   : > { %1750 = vmatpush.msrb.mxu2 %v1680_v12 }
 0x2ce   : > { %v2372_v53 = vpop.eup %2371  ;;  %v1465_v54 = vpop.xlane.xlu2 %1464 }
 0x2cf   : > { %v1492_v55 = vmul.f32 %v2372_v53, %v2356_v22  ;;  %2373 = vrcp.f32 %v1465_v54  ;;  %v1456_v56 = vpop.xlane.xlu1 %1455 }
 0x2d0   : > { %2375 = vrcp.f32 %v1456_v56  ;;  %v1962_v56 = vld [vmem:[%s2565_s20 + $0x18] sm:$0xff] }
 0x2d1   : > { %2299 = vmatmul.msk.f32.vlgmr.msra.gmra.mxu2 %vm1197_vm9, %v1492_v55  ;;  %v1929_v55 = vld [vmem:[%s2560_s27 + $0x18] sm:$0xff] }
 0x2d2   : > { %1842 = vmatpush.msra.mxu2 %v1684_v13 }
 0x2d5   : > { %v2374_v57 = vpop.eup %2373 }
 0x2d6   : > { %v2376_v58 = vpop.eup %2375  ;;  %v1489_v59 = vmul.f32 %v2374_v57, %v2358_v31  ;;  %v1477_v60 = vpop.xlane.xlu2 %1476  ;;  %v1928_v57 = vld [vmem:[%s2560_s27 + $0x10] sm:$0xff] }
 0x2d7   : > { %v1486_v61 = vmul.f32 %v2376_v58, %v2360_v34  ;;  %2377 = vrcp.f32 %v1477_v60  ;;  %v1468_v62 = vpop.xlane.xlu1 %1467  ;;  %v1961_v58 = vld [vmem:[%s2565_s20 + $0x10] sm:$0xff]  ;;  %v1960_v60 = vld [vmem:[%s2565_s20 + $0x8] sm:$0xff] }
 0x2d8   : > { %v1459_v63 = vpop.xlane.xlu0 %1458  ;;  %2379 = vrcp.f32 %v1468_v62  ;;  %2296 = vmatmul.msk.f32.vlgmr.msrb.gmra.mxu3 %vm1197_vm9, %v1489_v59  ;;  %v1927_v59 = vld [vmem:[%s2560_s27 + $0x8] sm:$0xff] }
 0x2d9   : > { %2381 = vrcp.f32 %v1459_v63  ;;  %2293 = vmatmul.msk.f32.vlgmr.msra.gmra.mxu0 %vm1197_vm9, %v1486_v61  ;;  %1773 = vmatpush.msrb.mxu3 %v1681_v3  ;;  %v1959_v61 = vld [vmem:[%s2565_s20] sm:$0xff] }
 0x2da   : > { %1704 = vmatpush.msra.mxu0 %v1678_v14  ;;  %v2346_v14 = vld [vmem:[%s532_s29] ss:$0 sm:$0xff] }
 0x2dd   : > { %v2378_v0 = vpop.eup %2377 }
 0x2de   : > { %v2380_v1 = vpop.eup %2379  ;;  %v1493_v5 = vmul.f32 %v2378_v0, %v2362_v40  ;;  %v1471_v6 = vpop.xlane.xlu2 %1470 }
 0x2df   : > { %v2382_v7 = vpop.eup %2381  ;;  %v1490_v8 = vmul.f32 %v2380_v1, %v2364_v42  ;;  %2383 = vrcp.f32 %v1471_v6 }
 0x2e0   : > { %v1487_v9 = vmul.f32 %v2382_v7, %v2366_v44  ;;  %2300 = vmatmul.msk.f32.vlgmr.msra.gmra.mxu3 %vm1197_vm9, %v1493_v5 }
 0x2e1   : > { %2297 = vmatmul.msk.f32.vlgmr.msrb.gmra.mxu0 %vm1197_vm9, %v1490_v8  ;;  %1865 = vmatpush.msra.mxu3 %v1685_v17 }
 0x2e2   : > { %2294 = vmatmul.msk.f32.vlgmr.msra.gmra.mxu1 %vm1197_vm9, %v1487_v9  ;;  %1796 = vmatpush.msrb.mxu0 %v1682_v16 }
 0x2e3   : > { %1727 = vmatpush.msra.mxu1 %v1679_v15 }
 0x2e5   : > { %v2384_v10 = vpop.eup %2383 }
 0x2e6   : > { %v1491_v11 = vmul.f32 %v2384_v10, %v2368_v47 }
 0x2ea   : > { %2298 = vmatmul.msk.f32.vlgmr.msrb.gmra.mxu1 %vm1197_vm9, %v1491_v11 }
 0x2eb   : > { %1819 = vmatpush.msrb.mxu1 %v1683_v18 }
 0x34c   : > { %v1560_v20 = vpop.f32.mrf.mxu2 }
 0x34d   : > { %2303 = vmatmul.msk.f32.vlgmr.msrb.gmra.mxu2 %vm1197_vm9, %v1560_v20 }
 0x354   : > { %v1652_v21 = vpop.f32.mrf.mxu2 }
 0x355   : > { %2307 = vmatmul.msk.f32.vlgmr.msra.gmra.mxu2 %vm1197_vm9, %v1652_v21 }
 0x356   : > { %v1514_v22 = vpop.f32.mrf.mxu0 }
 0x357   : > { %2301 = vmatmul.msk.f32.vlgmr.msra.gmra.mxu0 %vm1197_vm9, %v1514_v22 }
 0x358   : > { %1948 = vmatpush.msra.mxu0 %v1929_v55 }
 0x35a   : > { %1949 = vmatpush.msra.mxu0 %v1928_v57 }
 0x35b   : > { %v1583_v23 = vpop.f32.mrf.mxu3 }
 0x35c   : > { %2304 = vmatmul.msk.f32.vlgmr.msrb.gmra.mxu3 %vm1197_vm9, %v1583_v23  ;;  %1950 = vmatpush.msra.mxu0 %v1927_v59 }
 0x35e   : > { %v1606_v19 = vpop.f32.mrf.mxu0 }
 0x35f   : > { %v1537_v24 = vpop.f32.mrf.mxu1  ;;  %2305 = vmatmul.msk.f32.vlgmr.msrb.gmra.mxu0 %vm1197_vm9, %v1606_v19 }
 0x360   : > { %2302 = vmatmul.msk.f32.vlgmr.msra.gmra.mxu1 %vm1197_vm9, %v1537_v24 }
 0x361   : > { %1975 = vmatpush.msra.mxu1 %v1962_v56 }
 0x363   : > { %v1675_v25 = vpop.f32.mrf.mxu3  ;;  %1976 = vmatpush.msra.mxu1 %v1961_v58 }
 0x364   : > { %2308 = vmatmul.msk.f32.vlgmr.msra.gmra.mxu3 %vm1197_vm9, %v1675_v25  ;;  %v2013_v25 = vld [vmem:[%s2555_s14 + $0x38] sm:$0xff] }
 0x365   : > { %1977 = vmatpush.msra.mxu1 %v1960_v60  ;;  %2029 = vmatpush.msrb.mxu2 %v2013_v25 }
 0x367   : > { %v1629_v26 = vpop.f32.mrf.mxu1  ;;  %1978 = vmatpush.msra.mxu1 %v1959_v61 }
 0x368   : > { %2306 = vmatmul.msk.f32.vlgmr.msrb.gmra.mxu1 %vm1197_vm9, %v1629_v26  ;;  %v2012_v26 = vld [vmem:[%s2555_s14 + $0x30] sm:$0xff] }
 0x369   : > { %2030 = vmatpush.msrb.mxu2 %v2012_v26 }
 0x3d0   : > { %v1752_v27 = vpop.f32.mrf.mxu2 }
 0x3d1   : > { %v1871_v31 = vsel %vm561_vm1, %v1752_v27, 0.0  ;;  %v2011_v27 = vld [vmem:[%s2555_s14 + $0x28] sm:$0xff] }
 0x3d2   : > { %2031 = vmatpush.msrb.mxu2 %v2011_v27 }
 0x3d4   : > { %v1706_v28 = vpop.f32.mrf.mxu0 }
 0x3d5   : > { %v1870_v29 = vsel %vm561_vm1, %v1706_v28, 0.0  ;;  %v2010_v28 = vld [vmem:[%s2555_s14 + $0x20] sm:$0xff] }
 0x3d6   : > { %v1872_v32 = vadd.f32 %v1871_v31, %v1870_v29  ;;  %2032 = vmatpush.msrb.mxu2 %v2010_v28  ;;  %v2009_v29 = vld [vmem:[%s2555_s14 + $0x18] sm:$0xff]  ;;  %v2008_v31 = vld [vmem:[%s2555_s14 + $0x10] sm:$0xff] }
 0x3d8   : > { %v1844_v33 = vpop.f32.mrf.mxu2  ;;  %2033 = vmatpush.msrb.mxu2 %v2009_v29 }
 0x3d9   : > { %v1875_v38 = vsel %vm561_vm1, %v1844_v33, 0.0  ;;  %v2006_v33 = vld [vmem:[%s2555_s14] sm:$0xff] }
 0x3da   : > { %2034 = vmatpush.msrb.mxu2 %v2008_v31 }
 0x3dc   : > { %v1798_v34 = vpop.f32.mrf.mxu0 }
 0x3dd   : > { %v1729_v35 = vpop.f32.mrf.mxu1  ;;  %v1873_v36 = vsel %vm561_vm1, %v1798_v34, 0.0 }
 0x3de   : > { %v1874_v37 = vadd.f32 %v1873_v36, %v1872_v32  ;;  %v1877_v43 = vsel %vm561_vm1, %v1729_v35, 0.0  ;;  %v2007_v32 = vld [vmem:[%s2555_s14 + $0x8] sm:$0xff] }
 0x3df   : > { %v1775_v39 = vpop.f32.mrf.mxu3  ;;  %2035 = vmatpush.msrb.mxu2 %v2007_v32 }
 0x3e0   : > { %v1876_v40 = vadd.f32 %v1875_v38, %v1874_v37  ;;  %v1878_v42 = vsel %vm561_vm1, %v1775_v39, 0.0 }
 0x3e1   : > { %v1879_v45 = vadd.f32 %v1878_v42, %v1877_v43  ;;  %2036 = vmatpush.msrb.mxu2 %v2006_v33 }
 0x3e2   : > { %v2828_v41 = vadd.f32 %v1876_v40, %v2574_v2 }
 0x3e4   : > { %v1886_v44 = vmul.f32 %v2828_v41, %v2828_v41 }
 0x3e5   : > { %v1821_v46 = vpop.f32.mrf.mxu1 }
 0x3e6   : > { %v1880_v47 = vsel %vm561_vm1, %v1821_v46, 0.0  ;;  %v1888_v48 = vsel %vm561_vm1, %v1886_v44, 0.0 }
 0x3e7   : > { %v1881_v49 = vadd.f32 %v1880_v47, %v1879_v45  ;;  %1889 = vadd.xlane.f32.xlu0 %v1888_v48  ;;  %v1867_v2 = vpop.f32.mrf.mxu3 }
 0x3e8   : > { %v1882_v50 = vsel %vm561_vm1, %v1867_v2, 0.0 }
 0x3e9   : > { %v1883_v51 = vadd.f32 %v1882_v50, %v1881_v49 }
 0x3eb   : > { %v2838_v52 = vadd.f32 %v1883_v51, %v2578_v4  ;;  %v1926_v4 = vld [vmem:[%s2560_s27] sm:$0xff] }
 0x3ec   : > { %1951 = vmatpush.msra.mxu0 %v1926_v4 }
 0x3ed   : > { %v1887_v53 = vmul.f32 %v2838_v52, %v2838_v52 }
 0x3ef   : > { %v1891_v54 = vsel %vm561_vm1, %v1887_v53, 0.0 }
 0x3f0   : > { %1892 = vadd.xlane.f32.xlu1 %v1891_v54 }
 0x45a   : > { %v1890_v62 = vpop.xlane.xlu0 %1889 }
 0x45b   : > { %v1894_v63 = vmul.f32 %v1890_v62, %v2600_v30 }
 0x45d   : > { %v1896_v0 = vadd.f32 1e-06, %v1894_v63 }
 0x45f   : > { %2385 = vrsqrt.f32 %v1896_v0  ;;  %vm1904_vm11 = vweird.f32 %v1896_v0 }
 0x463   : > { %v1893_v1 = vpop.xlane.xlu1 %1892 }
 0x464   : > { %v1895_v5 = vmul.f32 %v1893_v1, %v2600_v30 }
 0x465   : > { %v2386_v6 = vpop.eup %2385 }
 0x466   : > { %v1899_v7 = vmul.f32 %v2386_v6, %v1896_v0  ;;  %v1897_v8 = vadd.f32 1e-06, %v1895_v5  ;;  %vm1905_vm10 = vweird.f32 %v2386_v6 }
 0x467   : > { %vm1906_vm12 = vmor %vm1904_vm11, %vm1905_vm10 }
 0x468   : > { %v1900_v9 = vmul.f32 %v2386_v6, %v1899_v7  ;;  %2387 = vrsqrt.f32 %v1897_v8  ;;  %vm1914_vm14 = vweird.f32 %v1897_v8 }
 0x46a   : > { %v1901_v10 = vmul.f32 0.5, %v1900_v9 }
 0x46c   : > { %v1902_v11 = vsub.f32 1.5, %v1901_v10 }
 0x46e   : > { %v2388_v12 = vpop.eup %2387  ;;  %v1903_v13 = vmul.f32 %v2386_v6, %v1902_v11 }
 0x46f   : > { %v1909_v3 = vmul.f32 %v2388_v12, %v1897_v8  ;;  %vm1915_vm13 = vweird.f32 %v2388_v12 }
 0x470   : > { %v1907_v15 = vsel %vm1906_vm12, %v2386_v6, %v1903_v13  ;;  %vm1916_vm15 = vmor %vm1914_vm14, %vm1915_vm13 }
 0x471   : > { %v1918_v16 = vmul.f32 %v1907_v15, %v2828_v41  ;;  %v1910_v17 = vmul.f32 %v2388_v12, %v1909_v3 }
 0x473   : > { %v1924_v18 = vmul.f32 %v2346_v14, %v1918_v16  ;;  %v1911_v20 = vmul.f32 0.5, %v1910_v17 }
 0x475   : > { %v1912_v21 = vsub.f32 1.5, %v1911_v20  ;;  %2309 = vmatmul.msk.f32.vlgmr.msra.gmra.mxu0 %vm561_vm1, %v1924_v18  ;;  %2311 = vmatmul.msk.f32.vlgmr.msra.gmra.mxu1 %vm561_vm1, %v1924_v18 }
 0x477   : > { %v1913_v22 = vmul.f32 %v2388_v12, %v1912_v21 }
 0x479   : > { %v1917_v23 = vsel %vm1916_vm15, %v2388_v12, %v1913_v22 }
 0x47a   : > { %v1919_v19 = vmul.f32 %v1917_v23, %v2838_v52 }
 0x47c   : > { %v1925_v24 = vmul.f32 %v2346_v14, %v1919_v19 }
 0x47e   : > { %2310 = vmatmul.msk.f32.gmra.mxu0 %vm561_vm1, %v1925_v24  ;;  %2312 = vmatmul.msk.f32.gmra.mxu1 %vm561_vm1, %v1925_v24 }
 0x4f2   : > { %v1953_v34 = vpop.f32.mrf.mxu0  ;;  %v1980_v50 = vpop.f32.mrf.mxu1 }
 0x4f3   : > { %v1988_v35 = vmul.f32 0.044715, %v1953_v34  ;;  %v1986_v47 = vmul.f32 0.5, %v1953_v34 }
 0x4f5   : > { %v1990_v36 = vmul.f32 %v1988_v35, %v1953_v34 }
 0x4f7   : > { %v1992_v37 = vmul.f32 %v1990_v36, %v1953_v34 }
 0x4f9   : > { %v1994_v38 = vadd.f32 %v1992_v37, %v1953_v34 }
 0x4fb   : > { %v1996_v39 = vmul.f32 0.7978846, %v1994_v38  ;;  %v1956_v40 = vpop.f32.mrf.mxu0  ;;  %v1983_v57 = vpop.f32.mrf.mxu1 }
 0x4fc   : > { %v1989_v42 = vmul.f32 0.044715, %v1956_v40  ;;  %v1987_v54 = vmul.f32 0.5, %v1956_v40 }
 0x4fd   : > { %2389 = vtanh.f32 %v1996_v39 }
 0x4fe   : > { %v1991_v43 = vmul.f32 %v1989_v42, %v1956_v40 }
 0x500   : > { %v1993_v44 = vmul.f32 %v1991_v43, %v1956_v40 }
 0x502   : > { %v1995_v45 = vadd.f32 %v1993_v44, %v1956_v40 }
 0x503   : > { %v2390_v46 = vpop.eup %2389 }
 0x504   : > { %v2000_v48 = vadd.f32 1.0, %v2390_v46  ;;  %v1997_v49 = vmul.f32 0.7978846, %v1995_v45 }
 0x506   : > { %v2002_v2 = vmul.f32 %v2000_v48, %v1986_v47  ;;  %2391 = vtanh.f32 %v1997_v49 }
 0x508   : > { %v2004_v51 = vmul.f32 %v2002_v2, %v1980_v50 }
 0x50a   : > { %2313 = vmatmul.msk.f32.vlgmr.msrb.gmra.mxu2 %vm2014_vm0, %v2004_v51 }
 0x50c   : > { %v2392_v53 = vpop.eup %2391 }
 0x50d   : > { %v2001_v55 = vadd.f32 1.0, %v2392_v53 }
 0x50f   : > { %v2003_v56 = vmul.f32 %v2001_v55, %v1987_v54 }
 0x511   : > { %v2005_v58 = vmul.f32 %v2003_v56, %v1983_v57 }
 0x513   : > { %2314 = vmatmul.msk.f32.gmra.mxu2 %vm2014_vm0, %v2005_v58 }
 0x58d   : > { %v2038_v59 = vpop.f32.mrf.mxu2 }
 0x58e   : > { %v2044_v60 = vadd.f32 %v2038_v59, %v2828_v41 }
 0x590   : > { %2046 = vst.msk [vmem:[#allocation2] sm:$0xff] %vm561_vm1, %v2044_v60 }
 0x595   : > { %2051 = sbr.rel (%p2315_p5) target bundleno = 1588 (0x634), region = 76 }
 0x596   : > { %v2041_v4 = vpop.f32.mrf.mxu2 }
 0x597   : > { %v2045_v61 = vadd.f32 %v2041_v4, %v2838_v52 }
 0x599   : > { %2047 = vst.msk [vmem:[#allocation2 + $0x8] sm:$0xff] %vm561_vm1, %v2045_v61 }
 0x59a   : > { %v2052_v62 = vmul.f32 %v2044_v60, %v2044_v60  ;;  %v2053_v0 = vmul.f32 %v2045_v61, %v2045_v61  ;;  %v2393_v16 = vld [vmem:[%s2895_s2] ss:$0 sm:$0xff] }
 0x59c   : > { %v2054_v63 = vsel %vm561_vm1, %v2052_v62, 0.0  ;;  %v2057_v1 = vsel %vm561_vm1, %v2053_v0, 0.0 }
 0x59d   : > { %2055 = vadd.xlane.f32.xlu0 %v2054_v63 }
 0x5a5   : > { %2058 = vadd.xlane.f32.xlu0 %v2057_v1 }
 0x610   : > { %v2056_v5 = vpop.xlane.xlu0 %2055 }
 0x611   : > { %v2060_v41 = vmul.f32 %v2056_v5, %v2600_v30 }
 0x613   : > { %v2062_v6 = vadd.f32 1e-06, %v2060_v41 }
 0x615   : > { %2394 = vrsqrt.f32 %v2062_v6  ;;  %vm2070_vm3 = vweird.f32 %v2062_v6 }
 0x618   : > { %v2059_v7 = vpop.xlane.xlu0 %2058 }
 0x619   : > { %v2061_v52 = vmul.f32 %v2059_v7, %v2600_v30 }
 0x61b   : > { %v2395_v8 = vpop.eup %2394  ;;  %v2063_v9 = vadd.f32 1e-06, %v2061_v52 }
 0x61c   : > { %v2065_v10 = vmul.f32 %v2395_v8, %v2062_v6  ;;  %vm2071_vm2 = vweird.f32 %v2395_v8 }
 0x61d   : > { %2396 = vrsqrt.f32 %v2063_v9  ;;  %vm2072_vm4 = vmor %vm2070_vm3, %vm2071_vm2  ;;  %vm2080_vm6 = vweird.f32 %v2063_v9 }
 0x61e   : > { %v2066_v11 = vmul.f32 %v2395_v8, %v2065_v10 }
 0x620   : > { %v2067_v12 = vmul.f32 0.5, %v2066_v11 }
 0x622   : > { %v2068_v13 = vsub.f32 1.5, %v2067_v12 }
 0x623   : > { %v2397_v14 = vpop.eup %2396 }
 0x624   : > { %v2069_v3 = vmul.f32 %v2395_v8, %v2068_v13  ;;  %v2075_v15 = vmul.f32 %v2397_v14, %v2063_v9  ;;  %vm2081_vm5 = vweird.f32 %v2397_v14 }
 0x625   : > { %vm2082_vm7 = vmor %vm2080_vm6, %vm2081_vm5 }
 0x626   : > { %v2073_v17 = vsel %vm2072_vm4, %v2395_v8, %v2069_v3  ;;  %v2076_v18 = vmul.f32 %v2397_v14, %v2075_v15 }
 0x627   : > { %v2084_v30 = vmul.f32 %v2073_v17, %v2044_v60 }
 0x628   : > { %v2077_v20 = vmul.f32 0.5, %v2076_v18 }
 0x629   : > { %v2090_v21 = vmul.f32 %v2393_v16, %v2084_v30 }
 0x62a   : > { %v2078_v22 = vsub.f32 1.5, %v2077_v20 }
 0x62b   : > { %2092 = vst.msk [vmem:[#allocation3] sm:$0xff] %vm561_vm1, %v2090_v21 }
 0x62c   : > { %v2079_v23 = vmul.f32 %v2397_v14, %v2078_v22 }
 0x62e   : > { %v2083_v19 = vsel %vm2082_vm7, %v2397_v14, %v2079_v23 }
 0x62f   : > { %v2085_v24 = vmul.f32 %v2083_v19, %v2045_v61 }
 0x631   : > { %v2091_v25 = vmul.f32 %v2393_v16, %v2085_v24 }
 0x633   : > { %2093 = vst.msk [vmem:[#allocation3 + $0x8] sm:$0xff] %vm561_vm1, %v2091_v25 }
 0x634 PF: > { %p2331_p6 = scmp.eq.s32.totalorder %s2513_s22, 1  ;;  %s2439_s14 = smov [#allocation3]  }
 0x635   : > { %s2099_s20 = sshll.u32 %s2439_s14, 4  ;;  %s2101_s13 = sshll.u32 %s2905_s12, 4  ;;  %s2100_s20 = int_to_ptr.vmem [resolvable:$true] %s2099_s20  ;;  %s2102_s13 = int_to_ptr.hbm [resolvable:$true] %s2101_s13 }
 0x636   : > { %s2440_s16 = smov 128   ;;  %s2441_s17 = smov 8  }
 0x637   : > { %2328 = dma.vmem_to_hbm [thread:$0]  (%p2331_p6), %s2100_s20, 256, %s2102_s13, [#allocation4], %s2440_s16, %s2440_s16, %s2441_s17  }
 0x638   : > { %2431 = dma.done.wait (%p2331_p6), [#allocation4], 256  }
 0x639   : > { %2433 = vsyncadd (%p2331_p6), [#allocation4], 4294967040 }
 0x63a PF: > { %s2915_s26 = sld [smem:[#allocation6_spill]] }
 0x640   : > { %s23_s21 = sadd.s32 1, %s2915_s26  }
 0x641   : > { %p20_p7 = scmp.ge.s32.totalorder %s23_s21, 4  }
 0x643   :  { %22 = sbr.rel (!%p20_p7) target bundleno = 5 (0x5), region = 127 }
 0x648   :  { %2118 = vsyncpa [#allocation4], 1 }
 0x649   :  { %2120 = vsyncpa [#allocation4 + $0x1], 1 }

</bundles_post_ra>
